<compile_context>
chip_gen: v7x
topology: tpu7x:2x2x1
jax: 0.10.0
libtpu: 0.0.40
codegen_flags: <defaults>
</compile_context>

<pallas_src>
import numpy as np

import jax
import jax.numpy as jnp
from jax.experimental import pallas as pl
from jax.experimental.pallas import tpu as pltpu


# ---------------------------------------------------------------------------
# Config (mirrors env / G hyperparams)
# ---------------------------------------------------------------------------
VQD = 4          # G.vqD
HIDDEN = 32      # G.hidden_size
NFILTER = 8      # G.nfilter
H0, WH_RATIO = 4, 1.0
W0 = int(WH_RATIO * H0)
STATE_N = 6      # env.observation_space['proprio'].shape[0]
BATCH = 2
H1, W1 = 2 * H0, 2 * W0            # 8 x 8 after first 2x upsample
H_OUT, W_OUT = 4 * H0, 4 * W0      # 16 x 16 after two 2x upsamples

# boundary masks use bitwise-and: per-sample heights must be powers of two
assert (H1 & (H1 - 1)) == 0 and (H_OUT & (H_OUT - 1)) == 0

# --- packed-slab row offsets (shared by prepare_params and the kernel) ------
# "wide" slab, lane width 128
_W_M2 = 0                               # stage-2 taps: 3 x (W1*NF = 64) rows
_W_M3 = _W_M2 + 3 * (W1 * NFILTER)      # 192: stage-3 taps stacked (384 rows)
_W_M4 = _W_M3 + 3 * (W_OUT * NFILTER)   # 576: stage-4 taps stacked, lane-padded
_W_B = _W_M4 + 3 * (W_OUT * NFILTER)    # 960: conv bias block (8 rows)
_W_ROWS = _W_B + 8                      # 968

# "small" slab, lane width 64
_S_M1 = 0                               # stage-1 taps: 3 x (W0*VQD = 16) rows
_S_S1 = _S_M1 + 3 * (W0 * VQD)          # 48 : vertical x2 upsample, stage 1
_S_S2 = _S_S1 + BATCH * H1              # 64 : vertical x2 upsample, stage 2
_S_W1 = _S_S2 + BATCH * H_OUT           # 96 : MLP layer 1 (64, 32)
_S_W2 = _S_W1 + VQD * H0 * W0           # 160: MLP layer 2 (32, 32)
_S_W3 = _S_W2 + HIDDEN                  # 192: MLP layer 3 (32, 6)
_S_MB = _S_W3 + HIDDEN                  # 224: MLP bias block (8 rows)
_S_ROWS = _S_MB + 8                     # 232


# ---------------------------------------------------------------------------
# Fused decoder kernel (single pallas_call, everything VMEM-resident)
# ---------------------------------------------------------------------------
def _decoder_kernel(a0_ref, flat_ref, wide_ref, small_ref, lcd_ref, pro_ref):
    f32 = jnp.float32
    K1 = W0 * VQD          # 16  (stage-1 contraction width per tap)
    N1 = W1 * NFILTER      # 64  (stage-1 output lanes / stage-2 K per tap)
    N2 = W_OUT * NFILTER   # 128 (stage-2/3 output lanes / per-tap K)

    def mm(a, b):
        # TODO(synk): add precision=jax.lax.Precision.HIGHEST if bit-level
        # parity with the fp32 PyTorch reference is required.
        return jnp.dot(a, b, preferred_element_type=f32)

    def taps(y, h_per_sample):
        """dy=0/1/2 vertical conv taps of y (rows = BATCH * h_per_sample).

        dy=0/2 taps are sublane rolls of the center tap, masked to zero on the
        first / last row of every per-sample block — this folds the vertical
        zero-padding of the 3x3 'same' conv and stops cross-sample bleed.
        """
        rows = y.shape[0]
        ridx = jax.lax.broadcasted_iota(jnp.int32, (rows, 1), 0)
        yy = ridx & (h_per_sample - 1)                 # row index within sample
        m_up = (yy != 0).astype(f32)
        m_dn = (yy != h_per_sample - 1).astype(f32)
        up = m_up * pltpu.roll(y, 1, 0)                # row y-1  (dy = 0)
        dn = m_dn * pltpu.roll(y, rows - 1, 0)         # row y+1  (dy = 2)
        return up, y, dn

    # ---------------- lcd conv head ----------------
    # stage 1: nearest x2 upsample + conv3x3 (vqD -> nf), (8,16) -> (16,64)
    s1 = small_ref[_S_S1:_S_S1 + BATCH * H1, 0:BATCH * H0]        # (16, 8)
    y = mm(s1, a0_ref[...])                                       # (16, 16)
    u, c, d = taps(y, H1)
    h = (mm(u, small_ref[_S_M1:_S_M1 + K1, :])
         + mm(c, small_ref[_S_M1 + K1:_S_M1 + 2 * K1, :])
         + mm(d, small_ref[_S_M1 + 2 * K1:_S_M1 + 3 * K1, :])
         + wide_ref[_W_B:_W_B + 1, 0:N1])
    h = jnp.maximum(h, 0.0)                                       # (16, 64)

    # stage 2: nearest x2 upsample + conv3x3 (nf -> nf), (16,64) -> (32,128)
    s2 = small_ref[_S_S2:_S_S2 + BATCH * H_OUT, 0:BATCH * H1]     # (32, 16)
    y = mm(s2, h)                                                 # (32, 64)
    u, c, d = taps(y, H_OUT)
    h = (mm(u, wide_ref[_W_M2:_W_M2 + N1, :])
         + mm(c, wide_ref[_W_M2 + N1:_W_M2 + 2 * N1, :])
         + mm(d, wide_ref[_W_M2 + 2 * N1:_W_M2 + 3 * N1, :])
         + wide_ref[_W_B + 1:_W_B + 2, :])
    h = jnp.maximum(h, 0.0)                                       # (32, 128)

    # stage 3: conv3x3 (nf -> nf); taps concatenated on lanes (128-aligned)
    # -> one K=384 matmul instead of three
    u, c, d = taps(h, H_OUT)
    x3 = jnp.concatenate([u, c, d], axis=1)                       # (32, 384)
    h = mm(x3, wide_ref[_W_M3:_W_M3 + 3 * N2, :]) + wide_ref[_W_B + 2:_W_B + 3, :]
    h = jnp.maximum(h, 0.0)                                       # (32, 128)

    # stage 4: conv3x3 (nf -> 1); M4 lanes zero-padded 16 -> 128
    u, c, d = taps(h, H_OUT)
    x4 = jnp.concatenate([u, c, d], axis=1)                       # (32, 384)
    h = mm(x4, wide_ref[_W_M4:_W_M4 + 3 * N2, :])                 # (32, 128)
    # ONE whole-block store of the (B*H_OUT, W_OUT) logits slab (no row loop)
    lcd_ref[...] = h[:, 0:W_OUT] + wide_ref[_W_B + 3:_W_B + 4, 0:W_OUT]

    # ---------------- proprio MLP (free filler under the conv matmuls) -------
    z = jnp.maximum(
        mm(flat_ref[...], small_ref[_S_W1:_S_W1 + VQD * H0 * W0, 0:HIDDEN])
        + small_ref[_S_MB:_S_MB + 1, 0:HIDDEN], 0.0)
    z = jnp.maximum(
        mm(z, small_ref[_S_W2:_S_W2 + HIDDEN, 0:HIDDEN])
        + small_ref[_S_MB + 1:_S_MB + 2, 0:HIDDEN], 0.0)
    pro_ref[...] = (mm(z, small_ref[_S_W3:_S_W3 + HIDDEN, 0:STATE_N])
                    + small_ref[_S_MB + 2:_S_MB + 3, 0:STATE_N])


def _decoder_pallas(kp, a0, flat):
    vmem = pl.BlockSpec(memory_space=pltpu.MemorySpace.VMEM)
    flops = 2 * (
        (BATCH * H1) * (BATCH * H0) * (W0 * VQD)              # S1 matmul
        + 3 * (BATCH * H1) * (W0 * VQD) * (W1 * NFILTER)      # stage-1 taps
        + (BATCH * H_OUT) * (BATCH * H1) * (W1 * NFILTER)     # S2 matmul
        + 3 * (BATCH * H_OUT) * (W1 * NFILTER) * 128          # stage-2 taps
        + 2 * (BATCH * H_OUT) * 384 * 128                     # stages 3-4
        + BATCH * (64 * HIDDEN + HIDDEN * HIDDEN + HIDDEN * STATE_N))
    bytes_accessed = 4 * (a0.size + flat.size + kp["wide"].size
                          + kp["small"].size + BATCH * H_OUT * W_OUT
                          + BATCH * STATE_N)
    # Single tiny gridless invocation.  If many decodes are batched, add a
    # leading grid axis over tiles with dimension_semantics=("parallel",) to
    # amortize launch/DMA overhead and use both v7x TensorCores.
    return pl.pallas_call(
        _decoder_kernel,
        out_shape=(jax.ShapeDtypeStruct((BATCH * H_OUT, W_OUT), jnp.float32),
                   jax.ShapeDtypeStruct((BATCH, STATE_N), jnp.float32)),
        in_specs=[vmem, vmem, vmem, vmem],
        out_specs=(vmem, vmem),
        cost_estimate=pl.CostEstimate(flops=flops, transcendentals=0,
                                      bytes_accessed=bytes_accessed),
    )(a0, flat, kp["wide"], kp["small"])


# ---------------------------------------------------------------------------
# One-time weight preparation (hoisted out of the forward pass)
# ---------------------------------------------------------------------------
def _center_select(batch, h_in, u):
    """Vertical nearest x{u} upsample as a 0/1 row-select matrix."""
    h_out = u * h_in
    s = np.zeros((batch * h_out, batch * h_in), np.float32)
    for b in range(batch):
        for y in range(h_out):
            s[b * h_out + y, b * h_in + y // u] = 1.0
    return s


def _col_struct(w_in, w_out, u):
    """T[dx, w, x] = 1 iff input col w feeds output col x at kernel offset dx."""
    t = np.zeros((3, w_in, w_out), np.float32)
    for dx in range(3):
        for x in range(w_out):
            j = x - 1 + dx
            if 0 <= j < w_out:
                t[dx, j // u, x] = 1.0
    return t


def _conv_mats(w_oihw, bias, w_in, u):
    """Per-tap banded M[dy]: (w_in*cin, w_out*cout) + bias row.

    Folds horizontal zero-pad + horizontal nearest x{u} upsample + channel mix
    of an `upsample(x u) -> conv3x3(pad=1)` stage for the A[(b*h+y),(w*c)]
    activation layout."""
    cout, cin = int(w_oihw.shape[0]), int(w_oihw.shape[1])
    w_out = u * w_in
    k = jnp.transpose(w_oihw, (2, 3, 1, 0))                 # (dy, dx, ci, co)
    t = jnp.asarray(_col_struct(w_in, w_out, u))            # (dx, w, x)
    m = jnp.einsum("dwx,ydio->ywixo", t, k)                 # (dy, w, ci, x, co)
    m = m.reshape(3, w_in * cin, w_out * cout)
    brow = jnp.tile(bias, (w_out,)).reshape(1, w_out * cout)
    return m, brow


def _pad_lanes(x, lanes):
    return jnp.pad(x, ((0, 0), (0, lanes - x.shape[1])))


def prepare_params(p):
    """Convert PyTorch-layout params into two packed kernel slabs (run ONCE)."""
    m1, b1 = _conv_mats(p["c1_w"], p["c1_b"], W0, 2)      # (3,16,64),  (1,64)
    m2, b2 = _conv_mats(p["c2_w"], p["c2_b"], W1, 2)      # (3,64,128), (1,128)
    m3, b3 = _conv_mats(p["c3_w"], p["c3_b"], W_OUT, 1)   # (3,128,128),(1,128)
    m4, b4 = _conv_mats(p["c4_w"], p["c4_b"], W_OUT, 1)   # (3,128,16), (1,16)

    s1 = jnp.asarray(_center_select(BATCH, H0, 2))        # (16, 8)
    s2 = jnp.asarray(_center_select(BATCH, H1, 2))        # (32, 16)

    # ---- "wide" slab (lane width 128): conv weights + conv biases, one DMA --
    bias_blk = jnp.zeros((8, 128), jnp.float32)
    bias_blk = bias_blk.at[0, :W1 * NFILTER].set(b1[0])
    bias_blk = bias_blk.at[1, :].set(b2[0])
    bias_blk = bias_blk.at[2, :].set(b3[0])
    bias_blk = bias_blk.at[3, :W_OUT].set(b4[0])
    wide = jnp.concatenate([
        m2.reshape(3 * W1 * NFILTER, 128),                         # rows   0:192
        m3.reshape(3 * W_OUT * NFILTER, 128),                      # rows 192:576
        _pad_lanes(m4.reshape(3 * W_OUT * NFILTER, W_OUT), 128),   # rows 576:960
        bias_blk,                                                  # rows 960:968
    ], axis=0)
    assert wide.shape == (_W_ROWS, 128)

    # Permute Linear-1 rows from torch Flatten(-3) order (c, h, w) to the
    # kernel's (h, w, c) flatten order so the MLP can share the NHWC input.
    perm = np.zeros(VQD * H0 * W0, np.int32)
    for h in range(H0):
        for w in range(W0):
            for c in range(VQD):
                perm[(h * W0 + w) * VQD + c] = c * H0 * W0 + h * W0 + w
    w1 = p["s_w1"][jnp.asarray(perm), :]                           # (64, 32)

    mlp_bias_blk = jnp.zeros((8, 64), jnp.float32)
    mlp_bias_blk = mlp_bias_blk.at[0, :HIDDEN].set(p["s_b1"])
    mlp_bias_blk = mlp_bias_blk.at[1, :HIDDEN].set(p["s_b2"])
    mlp_bias_blk = mlp_bias_blk.at[2, :STATE_N].set(p["s_b3"])

    # ---- "small" slab (lane width 64): stage-1 taps, upsample selects, MLP --
    small = jnp.concatenate([
        m1.reshape(3 * W0 * VQD, W1 * NFILTER),   # rows   0:48
        _pad_lanes(s1, 64),                       # rows  48:64
        _pad_lanes(s2, 64),                       # rows  64:96
        _pad_lanes(w1, 64),                       # rows  96:160
        _pad_lanes(p["s_w2"], 64),                # rows 160:192
        _pad_lanes(p["s_w3"], 64),                # rows 192:224
        mlp_bias_blk,                             # rows 224:232
    ], axis=0)
    assert small.shape == (_S_ROWS, 64)

    # TODO(synk): optionally cast the slabs to bfloat16 (v5e HBM-BW win); kept
    # f32 here to stay closest to the PyTorch fp32 reference numerics.
    return {"wide": wide, "small": small}


# ---------------------------------------------------------------------------
# Decoder (module-facing: NCHW in, NCHW logits out)
# ---------------------------------------------------------------------------
def init_params(key):
    ks = jax.random.split(key, 14)
    d_in = VQD * H0 * W0

    def nrm(k, shape, scale=0.1):
        return scale * jax.random.normal(k, shape, dtype=jnp.float32)

    return {
        # state_net (Linear weights stored as (in, out), torch flatten order)
        "s_w1": nrm(ks[0], (d_in, HIDDEN)),
        "s_b1": nrm(ks[1], (HIDDEN,)),
        "s_w2": nrm(ks[2], (HIDDEN, HIDDEN)),
        "s_b2": nrm(ks[3], (HIDDEN,)),
        "s_w3": nrm(ks[4], (HIDDEN, STATE_N)),
        "s_b3": nrm(ks[5], (STATE_N,)),
        # conv net (PyTorch OIHW weights)
        "c1_w": nrm(ks[6], (NFILTER, VQD, 3, 3)),
        "c1_b": nrm(ks[7], (NFILTER,)),
        "c2_w": nrm(ks[8], (NFILTER, NFILTER, 3, 3)),
        "c2_b": nrm(ks[9], (NFILTER,)),
        "c3_w": nrm(ks[10], (NFILTER, NFILTER, 3, 3)),
        "c3_b": nrm(ks[11], (NFILTER,)),
        "c4_w": nrm(ks[12], (1, NFILTER, 3, 3)),
        "c4_b": nrm(ks[13], (1,)),
    }


def decoder_forward(kparams, x_nchw):
    """x_nchw: (B, vqD, H0, W0) float32; kparams from prepare_params()."""
    b = x_nchw.shape[0]
    # (B, C, H, W) -> rows = B*H, lanes = W*C   (cheap, tiny array)
    a0 = jnp.transpose(x_nchw, (0, 2, 3, 1)).reshape(b * H0, W0 * VQD)
    flat = a0.reshape(b, H0 * W0 * VQD)          # (h, w, c)-order flatten

    lcd_slab, proprio_mean = _decoder_pallas(kparams, a0, flat)

    # (B*H_OUT, W_OUT) -> NCHW: trivial leading-dim split, done in XLA.
    lcd_logits = lcd_slab.reshape(b, 1, H_OUT, W_OUT)
    return {
        "lcd_logits": lcd_logits,                            # Bernoulli logits
        "proprio_mean": proprio_mean,                        # Normal mean
        "proprio_scale": jnp.ones_like(proprio_mean),        # Normal scale = 1
    }


if __name__ == "__main__":
    key = jax.random.PRNGKey(0)
    pkey, xkey = jax.random.split(key)
    params = init_params(pkey)
    kparams = prepare_params(params)          # once, outside the jitted forward
    x = jax.random.normal(xkey, (BATCH, VQD, H0, W0), dtype=jnp.float32)

    fwd = jax.jit(decoder_forward)
    out = jax.block_until_ready(fwd(kparams, x))

    assert out["lcd_logits"].shape == (BATCH, 1, H_OUT, W_OUT)
    assert out["proprio_mean"].shape == (BATCH, STATE_N)
    assert out["proprio_scale"].shape == (BATCH, STATE_N)
    print("KERNEL_OK")
</pallas_src>

<mosaic_0001>
module attributes {stable_mosaic.version = 11 : i64} {
  func.func @_decoder_kernel(%arg0: memref<8x16xf32, #tpu.memory_space<vmem>>, %arg1: memref<2x64xf32, #tpu.memory_space<vmem>>, %arg2: memref<968x128xf32, #tpu.memory_space<vmem>>, %arg3: memref<232x64xf32, #tpu.memory_space<vmem>>, %arg4: memref<32x16xf32, #tpu.memory_space<vmem>>, %arg5: memref<2x6xf32, #tpu.memory_space<vmem>>) attributes {dimension_semantics = [], scalar_prefetch = 0 : i64, scratch_operands = 0 : i64, tpu.core_type = #tpu.core_type<tc>} {
    %c48 = arith.constant 48 : index
    %c0 = arith.constant 0 : index
    %0 = vector.load %arg3[%c48, %c0] : memref<232x64xf32, #tpu.memory_space<vmem>>, vector<16x8xf32>
    %c0_0 = arith.constant 0 : index
    %c0_1 = arith.constant 0 : index
    %1 = vector.load %arg0[%c0_0, %c0_1] : memref<8x16xf32, #tpu.memory_space<vmem>>, vector<8x16xf32>
    %cst = arith.constant dense<0.000000e+00> : vector<16x16xf32>
    %2 = tpu.matmul %0, %1, %cst {dimension_numbers = #tpu.dot_dimension_numbers<[1], [0], [0], [1], [0, 0, 1, 1], [], []>} : vector<16x8xf32>, vector<8x16xf32>, vector<16x16xf32> -> vector<16x16xf32>
    %3 = tpu.iota {dimensions = array<i32: 0>} : vector<16x1xi32>
    %c7_i32 = arith.constant 7 : i32
    %4 = vector.broadcast %c7_i32 : i32 to vector<16x1xi32>
    %5 = arith.andi %3, %4 : vector<16x1xi32>
    %c0_i32 = arith.constant 0 : i32
    %6 = vector.broadcast %c0_i32 : i32 to vector<16x1xi32>
    %7 = arith.cmpi ne, %5, %6 : vector<16x1xi32>
    %8 = arith.extui %7 : vector<16x1xi1> to vector<16x1xi32>
    %9 = arith.sitofp %8 : vector<16x1xi32> to vector<16x1xf32>
    %c7_i32_2 = arith.constant 7 : i32
    %10 = vector.broadcast %c7_i32_2 : i32 to vector<16x1xi32>
    %11 = arith.cmpi ne, %5, %10 : vector<16x1xi32>
    %12 = arith.extui %11 : vector<16x1xi1> to vector<16x1xi32>
    %13 = arith.sitofp %12 : vector<16x1xi32> to vector<16x1xf32>
    %c1_i32 = arith.constant 1 : i32
    %14 = tpu.dynamic_rotate %2 by %c1_i32 dim 0 : vector<16x16xf32>, i32 -> vector<16x16xf32>
    %15 = vector.broadcast %9 : vector<16x1xf32> to vector<16x16xf32>
    %16 = arith.mulf %15, %14 : vector<16x16xf32>
    %c15_i32 = arith.constant 15 : i32
    %17 = tpu.dynamic_rotate %2 by %c15_i32 dim 0 : vector<16x16xf32>, i32 -> vector<16x16xf32>
    %18 = vector.broadcast %13 : vector<16x1xf32> to vector<16x16xf32>
    %19 = arith.mulf %18, %17 : vector<16x16xf32>
    %c0_3 = arith.constant 0 : index
    %c0_4 = arith.constant 0 : index
    %20 = vector.load %arg3[%c0_3, %c0_4] : memref<232x64xf32, #tpu.memory_space<vmem>>, vector<16x64xf32>
    %cst_5 = arith.constant dense<0.000000e+00> : vector<16x64xf32>
    %21 = tpu.matmul %16, %20, %cst_5 {dimension_numbers = #tpu.dot_dimension_numbers<[1], [0], [0], [1], [0, 0, 1, 1], [], []>} : vector<16x16xf32>, vector<16x64xf32>, vector<16x64xf32> -> vector<16x64xf32>
    %c16 = arith.constant 16 : index
    %c0_6 = arith.constant 0 : index
    %22 = vector.load %arg3[%c16, %c0_6] : memref<232x64xf32, #tpu.memory_space<vmem>>, vector<16x64xf32>
    %cst_7 = arith.constant dense<0.000000e+00> : vector<16x64xf32>
    %23 = tpu.matmul %2, %22, %cst_7 {dimension_numbers = #tpu.dot_dimension_numbers<[1], [0], [0], [1], [0, 0, 1, 1], [], []>} : vector<16x16xf32>, vector<16x64xf32>, vector<16x64xf32> -> vector<16x64xf32>
    %24 = arith.addf %21, %23 : vector<16x64xf32>
    %c32 = arith.constant 32 : index
    %c0_8 = arith.constant 0 : index
    %25 = vector.load %arg3[%c32, %c0_8] : memref<232x64xf32, #tpu.memory_space<vmem>>, vector<16x64xf32>
    %cst_9 = arith.constant dense<0.000000e+00> : vector<16x64xf32>
    %26 = tpu.matmul %19, %25, %cst_9 {dimension_numbers = #tpu.dot_dimension_numbers<[1], [0], [0], [1], [0, 0, 1, 1], [], []>} : vector<16x16xf32>, vector<16x64xf32>, vector<16x64xf32> -> vector<16x64xf32>
    %27 = arith.addf %24, %26 : vector<16x64xf32>
    %c960 = arith.constant 960 : index
    %c0_10 = arith.constant 0 : index
    %28 = vector.load %arg2[%c960, %c0_10] : memref<968x128xf32, #tpu.memory_space<vmem>>, vector<1x64xf32>
    %29 = vector.broadcast %28 : vector<1x64xf32> to vector<16x64xf32>
    %30 = arith.addf %27, %29 : vector<16x64xf32>
    %cst_11 = arith.constant 0.000000e+00 : f32
    %31 = vector.broadcast %cst_11 : f32 to vector<16x64xf32>
    %32 = arith.maximumf %30, %31 : vector<16x64xf32>
    %c64 = arith.constant 64 : index
    %c0_12 = arith.constant 0 : index
    %33 = vector.load %arg3[%c64, %c0_12] : memref<232x64xf32, #tpu.memory_space<vmem>>, vector<32x16xf32>
    %cst_13 = arith.constant dense<0.000000e+00> : vector<32x64xf32>
    %34 = tpu.matmul %33, %32, %cst_13 {dimension_numbers = #tpu.dot_dimension_numbers<[1], [0], [0], [1], [0, 0, 1, 1], [], []>} : vector<32x16xf32>, vector<16x64xf32>, vector<32x64xf32> -> vector<32x64xf32>
    %35 = tpu.iota {dimensions = array<i32: 0>} : vector<32x1xi32>
    %c15_i32_14 = arith.constant 15 : i32
    %36 = vector.broadcast %c15_i32_14 : i32 to vector<32x1xi32>
    %37 = arith.andi %35, %36 : vector<32x1xi32>
    %c0_i32_15 = arith.constant 0 : i32
    %38 = vector.broadcast %c0_i32_15 : i32 to vector<32x1xi32>
    %39 = arith.cmpi ne, %37, %38 : vector<32x1xi32>
    %40 = arith.extui %39 : vector<32x1xi1> to vector<32x1xi32>
    %41 = arith.sitofp %40 : vector<32x1xi32> to vector<32x1xf32>
    %c15_i32_16 = arith.constant 15 : i32
    %42 = vector.broadcast %c15_i32_16 : i32 to vector<32x1xi32>
    %43 = arith.cmpi ne, %37, %42 : vector<32x1xi32>
    %44 = arith.extui %43 : vector<32x1xi1> to vector<32x1xi32>
    %45 = arith.sitofp %44 : vector<32x1xi32> to vector<32x1xf32>
    %c1_i32_17 = arith.constant 1 : i32
    %46 = tpu.dynamic_rotate %34 by %c1_i32_17 dim 0 : vector<32x64xf32>, i32 -> vector<32x64xf32>
    %47 = vector.broadcast %41 : vector<32x1xf32> to vector<32x64xf32>
    %48 = arith.mulf %47, %46 : vector<32x64xf32>
    %c31_i32 = arith.constant 31 : i32
    %49 = tpu.dynamic_rotate %34 by %c31_i32 dim 0 : vector<32x64xf32>, i32 -> vector<32x64xf32>
    %50 = vector.broadcast %45 : vector<32x1xf32> to vector<32x64xf32>
    %51 = arith.mulf %50, %49 : vector<32x64xf32>
    %c0_18 = arith.constant 0 : index
    %c0_19 = arith.constant 0 : index
    %52 = vector.load %arg2[%c0_18, %c0_19] : memref<968x128xf32, #tpu.memory_space<vmem>>, vector<64x128xf32>
    %cst_20 = arith.constant dense<0.000000e+00> : vector<32x128xf32>
    %53 = tpu.matmul %48, %52, %cst_20 {dimension_numbers = #tpu.dot_dimension_numbers<[1], [0], [0], [1], [0, 0, 1, 1], [], []>} : vector<32x64xf32>, vector<64x128xf32>, vector<32x128xf32> -> vector<32x128xf32>
    %c64_21 = arith.constant 64 : index
    %c0_22 = arith.constant 0 : index
    %54 = vector.load %arg2[%c64_21, %c0_22] : memref<968x128xf32, #tpu.memory_space<vmem>>, vector<64x128xf32>
    %cst_23 = arith.constant dense<0.000000e+00> : vector<32x128xf32>
    %55 = tpu.matmul %34, %54, %cst_23 {dimension_numbers = #tpu.dot_dimension_numbers<[1], [0], [0], [1], [0, 0, 1, 1], [], []>} : vector<32x64xf32>, vector<64x128xf32>, vector<32x128xf32> -> vector<32x128xf32>
    %56 = arith.addf %53, %55 : vector<32x128xf32>
    %c128 = arith.constant 128 : index
    %c0_24 = arith.constant 0 : index
    %57 = vector.load %arg2[%c128, %c0_24] : memref<968x128xf32, #tpu.memory_space<vmem>>, vector<64x128xf32>
    %cst_25 = arith.constant dense<0.000000e+00> : vector<32x128xf32>
    %58 = tpu.matmul %51, %57, %cst_25 {dimension_numbers = #tpu.dot_dimension_numbers<[1], [0], [0], [1], [0, 0, 1, 1], [], []>} : vector<32x64xf32>, vector<64x128xf32>, vector<32x128xf32> -> vector<32x128xf32>
    %59 = arith.addf %56, %58 : vector<32x128xf32>
    %c961 = arith.constant 961 : index
    %c0_26 = arith.constant 0 : index
    %60 = vector.load %arg2[%c961, %c0_26] : memref<968x128xf32, #tpu.memory_space<vmem>>, vector<1x128xf32>
    %61 = vector.broadcast %60 : vector<1x128xf32> to vector<32x128xf32>
    %62 = arith.addf %59, %61 : vector<32x128xf32>
    %cst_27 = arith.constant 0.000000e+00 : f32
    %63 = vector.broadcast %cst_27 : f32 to vector<32x128xf32>
    %64 = arith.maximumf %62, %63 : vector<32x128xf32>
    %65 = tpu.iota {dimensions = array<i32: 0>} : vector<32x1xi32>
    %c15_i32_28 = arith.constant 15 : i32
    %66 = vector.broadcast %c15_i32_28 : i32 to vector<32x1xi32>
    %67 = arith.andi %65, %66 : vector<32x1xi32>
    %c0_i32_29 = arith.constant 0 : i32
    %68 = vector.broadcast %c0_i32_29 : i32 to vector<32x1xi32>
    %69 = arith.cmpi ne, %67, %68 : vector<32x1xi32>
    %70 = arith.extui %69 : vector<32x1xi1> to vector<32x1xi32>
    %71 = arith.sitofp %70 : vector<32x1xi32> to vector<32x1xf32>
    %c15_i32_30 = arith.constant 15 : i32
    %72 = vector.broadcast %c15_i32_30 : i32 to vector<32x1xi32>
    %73 = arith.cmpi ne, %67, %72 : vector<32x1xi32>
    %74 = arith.extui %73 : vector<32x1xi1> to vector<32x1xi32>
    %75 = arith.sitofp %74 : vector<32x1xi32> to vector<32x1xf32>
    %c1_i32_31 = arith.constant 1 : i32
    %76 = tpu.dynamic_rotate %64 by %c1_i32_31 dim 0 : vector<32x128xf32>, i32 -> vector<32x128xf32>
    %77 = vector.broadcast %71 : vector<32x1xf32> to vector<32x128xf32>
    %78 = arith.mulf %77, %76 : vector<32x128xf32>
    %c31_i32_32 = arith.constant 31 : i32
    %79 = tpu.dynamic_rotate %64 by %c31_i32_32 dim 0 : vector<32x128xf32>, i32 -> vector<32x128xf32>
    %80 = vector.broadcast %75 : vector<32x1xf32> to vector<32x128xf32>
    %81 = arith.mulf %80, %79 : vector<32x128xf32>
    %82 = tpu.concatenate %78, %64, %81 in 1 : vector<32x128xf32>, vector<32x128xf32>, vector<32x128xf32> -> vector<32x384xf32>
    %c192 = arith.constant 192 : index
    %c0_33 = arith.constant 0 : index
    %83 = vector.load %arg2[%c192, %c0_33] : memref<968x128xf32, #tpu.memory_space<vmem>>, vector<384x128xf32>
    %cst_34 = arith.constant dense<0.000000e+00> : vector<32x128xf32>
    %84 = tpu.matmul %82, %83, %cst_34 {dimension_numbers = #tpu.dot_dimension_numbers<[1], [0], [0], [1], [0, 0, 1, 1], [], []>} : vector<32x384xf32>, vector<384x128xf32>, vector<32x128xf32> -> vector<32x128xf32>
    %c962 = arith.constant 962 : index
    %c0_35 = arith.constant 0 : index
    %85 = vector.load %arg2[%c962, %c0_35] : memref<968x128xf32, #tpu.memory_space<vmem>>, vector<1x128xf32>
    %86 = vector.broadcast %85 : vector<1x128xf32> to vector<32x128xf32>
    %87 = arith.addf %84, %86 : vector<32x128xf32>
    %cst_36 = arith.constant 0.000000e+00 : f32
    %88 = vector.broadcast %cst_36 : f32 to vector<32x128xf32>
    %89 = arith.maximumf %87, %88 : vector<32x128xf32>
    %90 = tpu.iota {dimensions = array<i32: 0>} : vector<32x1xi32>
    %c15_i32_37 = arith.constant 15 : i32
    %91 = vector.broadcast %c15_i32_37 : i32 to vector<32x1xi32>
    %92 = arith.andi %90, %91 : vector<32x1xi32>
    %c0_i32_38 = arith.constant 0 : i32
    %93 = vector.broadcast %c0_i32_38 : i32 to vector<32x1xi32>
    %94 = arith.cmpi ne, %92, %93 : vector<32x1xi32>
    %95 = arith.extui %94 : vector<32x1xi1> to vector<32x1xi32>
    %96 = arith.sitofp %95 : vector<32x1xi32> to vector<32x1xf32>
    %c15_i32_39 = arith.constant 15 : i32
    %97 = vector.broadcast %c15_i32_39 : i32 to vector<32x1xi32>
    %98 = arith.cmpi ne, %92, %97 : vector<32x1xi32>
    %99 = arith.extui %98 : vector<32x1xi1> to vector<32x1xi32>
    %100 = arith.sitofp %99 : vector<32x1xi32> to vector<32x1xf32>
    %c1_i32_40 = arith.constant 1 : i32
    %101 = tpu.dynamic_rotate %89 by %c1_i32_40 dim 0 : vector<32x128xf32>, i32 -> vector<32x128xf32>
    %102 = vector.broadcast %96 : vector<32x1xf32> to vector<32x128xf32>
    %103 = arith.mulf %102, %101 : vector<32x128xf32>
    %c31_i32_41 = arith.constant 31 : i32
    %104 = tpu.dynamic_rotate %89 by %c31_i32_41 dim 0 : vector<32x128xf32>, i32 -> vector<32x128xf32>
    %105 = vector.broadcast %100 : vector<32x1xf32> to vector<32x128xf32>
    %106 = arith.mulf %105, %104 : vector<32x128xf32>
    %107 = tpu.concatenate %103, %89, %106 in 1 : vector<32x128xf32>, vector<32x128xf32>, vector<32x128xf32> -> vector<32x384xf32>
    %c576 = arith.constant 576 : index
    %c0_42 = arith.constant 0 : index
    %108 = vector.load %arg2[%c576, %c0_42] : memref<968x128xf32, #tpu.memory_space<vmem>>, vector<384x128xf32>
    %cst_43 = arith.constant dense<0.000000e+00> : vector<32x128xf32>
    %109 = tpu.matmul %107, %108, %cst_43 {dimension_numbers = #tpu.dot_dimension_numbers<[1], [0], [0], [1], [0, 0, 1, 1], [], []>} : vector<32x384xf32>, vector<384x128xf32>, vector<32x128xf32> -> vector<32x128xf32>
    %110 = vector.extract_strided_slice %109 {offsets = [0, 0], sizes = [32, 16], strides = [1, 1]} : vector<32x128xf32> to vector<32x16xf32>
    %c963 = arith.constant 963 : index
    %c0_44 = arith.constant 0 : index
    %111 = vector.load %arg2[%c963, %c0_44] : memref<968x128xf32, #tpu.memory_space<vmem>>, vector<1x16xf32>
    %112 = vector.broadcast %111 : vector<1x16xf32> to vector<32x16xf32>
    %113 = arith.addf %110, %112 : vector<32x16xf32>
    %c0_45 = arith.constant 0 : index
    %c0_46 = arith.constant 0 : index
    %114 = vector.load %arg4[%c0_45, %c0_46] : memref<32x16xf32, #tpu.memory_space<vmem>>, vector<32x16xf32>
    tpu.vector_store %arg4[%c0_45, %c0_46], %113 {strides = array<i32>} : memref<32x16xf32, #tpu.memory_space<vmem>>, vector<32x16xf32>,
    %c0_47 = arith.constant 0 : index
    %c0_48 = arith.constant 0 : index
    %115 = vector.load %arg1[%c0_47, %c0_48] : memref<2x64xf32, #tpu.memory_space<vmem>>, vector<2x64xf32>
    %c96 = arith.constant 96 : index
    %c0_49 = arith.constant 0 : index
    %116 = vector.load %arg3[%c96, %c0_49] : memref<232x64xf32, #tpu.memory_space<vmem>>, vector<64x32xf32>
    %cst_50 = arith.constant dense<0.000000e+00> : vector<2x32xf32>
    %117 = tpu.matmul %115, %116, %cst_50 {dimension_numbers = #tpu.dot_dimension_numbers<[1], [0], [0], [1], [0, 0, 1, 1], [], []>} : vector<2x64xf32>, vector<64x32xf32>, vector<2x32xf32> -> vector<2x32xf32>
    %c224 = arith.constant 224 : index
    %c0_51 = arith.constant 0 : index
    %118 = vector.load %arg3[%c224, %c0_51] : memref<232x64xf32, #tpu.memory_space<vmem>>, vector<1x32xf32>
    %119 = vector.broadcast %118 : vector<1x32xf32> to vector<2x32xf32>
    %120 = arith.addf %117, %119 : vector<2x32xf32>
    %cst_52 = arith.constant 0.000000e+00 : f32
    %121 = vector.broadcast %cst_52 : f32 to vector<2x32xf32>
    %122 = arith.maximumf %120, %121 : vector<2x32xf32>
    %c160 = arith.constant 160 : index
    %c0_53 = arith.constant 0 : index
    %123 = vector.load %arg3[%c160, %c0_53] : memref<232x64xf32, #tpu.memory_space<vmem>>, vector<32x32xf32>
    %cst_54 = arith.constant dense<0.000000e+00> : vector<2x32xf32>
    %124 = tpu.matmul %122, %123, %cst_54 {dimension_numbers = #tpu.dot_dimension_numbers<[1], [0], [0], [1], [0, 0, 1, 1], [], []>} : vector<2x32xf32>, vector<32x32xf32>, vector<2x32xf32> -> vector<2x32xf32>
    %c225 = arith.constant 225 : index
    %c0_55 = arith.constant 0 : index
    %125 = vector.load %arg3[%c225, %c0_55] : memref<232x64xf32, #tpu.memory_space<vmem>>, vector<1x32xf32>
    %126 = vector.broadcast %125 : vector<1x32xf32> to vector<2x32xf32>
    %127 = arith.addf %124, %126 : vector<2x32xf32>
    %cst_56 = arith.constant 0.000000e+00 : f32
    %128 = vector.broadcast %cst_56 : f32 to vector<2x32xf32>
    %129 = arith.maximumf %127, %128 : vector<2x32xf32>
    %c192_57 = arith.constant 192 : index
    %c0_58 = arith.constant 0 : index
    %130 = vector.load %arg3[%c192_57, %c0_58] : memref<232x64xf32, #tpu.memory_space<vmem>>, vector<32x6xf32>
    %cst_59 = arith.constant dense<0.000000e+00> : vector<2x6xf32>
    %131 = tpu.matmul %129, %130, %cst_59 {dimension_numbers = #tpu.dot_dimension_numbers<[1], [0], [0], [1], [0, 0, 1, 1], [], []>} : vector<2x32xf32>, vector<32x6xf32>, vector<2x6xf32> -> vector<2x6xf32>
    %c226 = arith.constant 226 : index
    %c0_60 = arith.constant 0 : index
    %132 = vector.load %arg3[%c226, %c0_60] : memref<232x64xf32, #tpu.memory_space<vmem>>, vector<1x6xf32>
    %133 = vector.broadcast %132 : vector<1x6xf32> to vector<2x6xf32>
    %134 = arith.addf %131, %133 : vector<2x6xf32>
    %c0_61 = arith.constant 0 : index
    %c0_62 = arith.constant 0 : index
    %135 = vector.load %arg5[%c0_61, %c0_62] : memref<2x6xf32, #tpu.memory_space<vmem>>, vector<2x6xf32>
    tpu.vector_store %arg5[%c0_61, %c0_62], %134 {strides = array<i32>} : memref<2x6xf32, #tpu.memory_space<vmem>>, vector<2x6xf32>,
    return
  }
}

</mosaic_0001>

<bundles_post_ra>
// kernel: decoder_forward.1
= control target key start
LH: loop header
LB: loop body
LE: loop exit
PB: predicated region body
PF: predicated region fallthrough
CT: control target
= control target key end

     0   :  { %11 = vsyncpa [#allocation3], 0  ;;  %s2783_s0 = inlined_call_operand.vmem [shape: f32[8,16], index: 0, kind: input, shape index: {}]   ;;  %s2784_s1 = inlined_call_operand.vmem [shape: f32[2,64], index: 1, kind: input, shape index: {}]   ;;  %s2785_s2 = inlined_call_operand.hbm [shape: f32[968,128], index: 2, kind: input, shape index: {}]   ;;  %s2786_s3 = inlined_call_operand.vmem [shape: f32[232,64], index: 3, kind: input, shape index: {}]   ;;  %s2787_s4 = inlined_call_operand.hbm [shape: f32[32,16], index: 4, kind: output, shape index: {0}]   ;;  %s2788_s5 = inlined_call_operand.hbm [shape: f32[2,6], index: 5, kind: output, shape index: {1}]  }
   0x1   :  { %12 = vsyncpa [#allocation4], 0 }
   0x2   :  { %13 = vsyncpa [#allocation7], 0  ;;  %s2466_s18 = smov [#allocation2]   ;;  %s2394_s22 = scalar_lea.hbm %s2785_s2, 15488 }
   0x3   :  { %s23_s19 = sshll.u32 %s2466_s18, 4  ;;  %p2395_p0 = scmp.ne.s32.totalorder %s2785_s2, %s2394_s22  ;;  %s24_s19 = int_to_ptr.vmem [resolvable:$true] %s23_s19 }
   0x4   :  { %p2398_p1 = scmp.lt.u32.totalorder %s2394_s22, %s2785_s2 }
   0x6   :  { %p2400_p2 = pnand %p2398_p1, %p2395_p0 }
   0x8   :  { %2403 = shalt.err (!%p2400_p2)
}
   0x9   :  { %s2404_s27 = scalar_lea.vmem %s24_s19, 15488  ;;  %p2409_p4 = scmp.lt.s32.totalorder %s24_s19, %s24_s19 }
   0xa   :  { %p2405_p3 = scmp.ne.s32.totalorder %s24_s19, %s2404_s27  ;;  %p2410_p5 = scmp.lt.s32.totalorder %s2404_s27, %s2404_s27 }
   0xc   :  { %p2411_p6 = por %p2410_p5, %p2409_p4 }
   0xe   :  { %p2412_p7 = pnand %p2411_p6, %p2405_p3 }
  0x10   :  { %2415 = shalt.err (!%p2412_p7)
}
  0x11   :  { %s2467_s28 = smov 128   ;;  %s2468_s29 = smov 8  }
  0x12   :  { %29 = dma.hbm_to_vmem [thread:$0]  %s2785_s2, 15488, %s24_s19, [#allocation3], %s2467_s28, %s2467_s28, %s2468_s29  }
  0x13   :  { %2460 = dma.done.wait [#allocation3], 15488  }
  0x14   :  { %2461 = vsyncadd [#allocation3], 4294951808  ;;  %vm38_vm0 = vcmask 64512   ;;  %v37_v0 = vld [vmem:[%s2783_s0] sm:$0xff]  ;;  %v35_v1 = vld [vmem:[%s2786_s3 + $0x30] sm:$0xff]  ;;  %v120_v12 = vlaneseq  ;;  %vm155_vm1 = vcmask 130048  }
  0x15   :  { %v36_v2 = vld [vmem:[%s2786_s3 + $0x38] sm:$0xff]  ;;  %1939 = vmatprep.subr.mxu0 %v37_v0  ;;  %1941 = vmatprep.mubr.msk.f32.mxu0 %vm38_vm0, %v35_v1  ;;  %v153_v3 = vld [vmem:[%s2786_s3 + $0x10] sm:$0xff]  ;;  %v151_v6 = vld [vmem:[%s2786_s3] sm:$0xff]  ;;  %v2469_v23 = vmov 0.0   ;;  %vm583_vm8 = vcmask 523264   ;;  %vm2471_vm13 = vmmov 0  }
  0x16   :  { %v154_v4 = vld [vmem:[%s2786_s3 + $0x18] sm:$0xff]  ;;  %1940 = vmatpush3.msra.mxu0 %v37_v0  ;;  %v152_v7 = vld [vmem:[%s2786_s3 + $0x8] sm:$0xff]  ;;  %v318_v9 = vld [vmem:[%s2786_s3 + $0x20] sm:$0xff]  ;;  %v2546_v13 = vshrl.u32 %v120_v12, 7  ;;  %vm1503_vm14 = vcmask 261120   ;;  %s2472_s18 = smov [#allocation5]  }
  0x17   :  { %v2158_v5 = vpack.c.bf16 %v154_v4, %v153_v3  ;;  %1942 = vmatmul.mubr.msk.f32.vlgmr.msra.gmra.mrb[0].mxu0 %vm38_vm0, %v36_v2  ;;  %v2162_v8 = vpack.c.bf16 %v152_v7, %v151_v6  ;;  %v319_v10 = vld [vmem:[%s2786_s3 + $0x28] sm:$0xff]  ;;  %v412_v36 = vld [vmem:[%s2786_s3 + $0x40] sm:$0xff]  ;;  %v577_v52 = vld [vmem:[#allocation2 + $0x50] sm:$0xff]  ;;  %s1667_s19 = sshll.u32 %s2472_s18, 4  ;;  %s1668_s19 = int_to_ptr.vmem [resolvable:$true] %s1667_s19 }
  0x18   :  { %v2166_v11 = vpack.c.bf16 %v319_v10, %v318_v9  ;;  %v2549_v14 = vadd.s32 8, %v2546_v13  ;;  %v123_v16 = vand.u32 7, %v2546_v13  ;;  %vm139_vm5 = vcmp.lt.s32.totalorder %v2546_v13, 1  ;;  %v1705_v40 = vld [vmem:[#allocation2 + $0x3c0] ss:$0 sm:$0xff]  ;;  %v576_v48 = vld [vmem:[#allocation2 + $0x48] sm:$0xff]  ;;  %p2421_p9 = scmp.lt.s32.totalorder %s1668_s19, %s1668_s19 }
  0x19   :  { %2159 = vmatprep.subr.bf16.mxu0 %v2158_v5  ;;  %2163 = vmatprep.subr.bf16.mxu1 %v2162_v8  ;;  %vm146_vm6 = vcmp.lt.s32.totalorder %v2546_v13, 7  ;;  %v575_v47 = vld [vmem:[#allocation2 + $0x40] sm:$0xff]  ;;  %v578_v53 = vld [vmem:[#allocation2 + $0x58] sm:$0xff]  ;;  %v413_v54 = vld [vmem:[%s2786_s3 + $0x48] sm:$0xff]  ;;  %s2416_s20 = scalar_lea.vmem %s1668_s19, 512 }
  0x1a   :  { %2161 = vmatpush3.bf16.msra.mxu0 %v2158_v5  ;;  %2165 = vmatpush3.bf16.msra.mxu1 %v2162_v8  ;;  %v124_v15 = vand.u32 7, %v2549_v14  ;;  %vm125_vm2 = vcmp.ne.s32.totalorder %v123_v16, 0  ;;  %vm131_vm4 = vcmp.ne.s32.totalorder %v123_v16, 7  ;;  %v2174_v51 = vpack.c.bf16 %v576_v48, %v575_v47  ;;  %v414_v55 = vld [vmem:[%s2786_s3 + $0x50] sm:$0xff]  ;;  %v579_v57 = vld [vmem:[#allocation2 + $0x60] sm:$0xff]  ;;  %v580_v58 = vld [vmem:[#allocation2 + $0x68] sm:$0xff]  ;;  %p2417_p8 = scmp.ne.s32.totalorder %s1668_s19, %s2416_s20  ;;  %p2422_p10 = scmp.lt.s32.totalorder %s2416_s20, %s2416_s20 }
  0x1b   :  { %2167 = vmatprep.subr.bf16.mxu1 %v2166_v11  ;;  %v1695_v24 = vsel %vm125_vm2, 1.0, %v2469_v23  ;;  %v1697_v26 = vsel %vm131_vm4, 1.0, %v2469_v23  ;;  %v2178_v56 = vpack.c.bf16 %v578_v53, %v577_v52  ;;  %v415_v59 = vld [vmem:[%s2786_s3 + $0x58] sm:$0xff]  ;;  %v2182_v60 = vpack.c.bf16 %v580_v58, %v579_v57  ;;  %v581_v61 = vld [vmem:[#allocation2 + $0x70] sm:$0xff]  ;;  %v567_v0 = vld [vmem:[#allocation2] sm:$0xff] }
  0x1c   :  { %vm126_vm3 = vcmp.ne.s32.totalorder %v124_v15, 0  ;;  %vm132_vm7 = vcmp.ne.s32.totalorder %v124_v15, 7  ;;  %v582_v62 = vld [vmem:[#allocation2 + $0x78] sm:$0xff]  ;;  %v568_v1 = vld [vmem:[#allocation2 + $0x8] sm:$0xff]  ;;  %v940_v3 = vld [vmem:[#allocation2 + $0x140] sm:$0xff]  ;;  %v513_v48 = vadd.s32 16, %v2546_v13  ;;  %p2423_p11 = por %p2422_p10, %p2421_p9 }
  0x1d   :  { %v1696_v25 = vsel %vm126_vm3, 1.0, %v2469_v23  ;;  %v1698_v34 = vsel %vm132_vm7, 1.0, %v2469_v23  ;;  %v2186_v63 = vpack.c.bf16 %v582_v62, %v581_v61  ;;  %v2190_v2 = vpack.c.bf16 %v568_v1, %v567_v0  ;;  %v941_v4 = vld [vmem:[#allocation2 + $0x148] sm:$0xff]  ;;  %v924_v5 = vld [vmem:[#allocation2 + $0xc0] sm:$0xff]  ;;  %v942_v8 = vld [vmem:[#allocation2 + $0x150] sm:$0xff] }
  0x1e   :  { %v2222_v6 = vpack.c.bf16 %v941_v4, %v940_v3  ;;  %v925_v7 = vld [vmem:[#allocation2 + $0xc8] sm:$0xff]  ;;  %v943_v9 = vld [vmem:[#allocation2 + $0x158] sm:$0xff]  ;;  %v926_v12 = vld [vmem:[#allocation2 + $0xd0] sm:$0xff]  ;;  %p2424_p12 = pnand %p2423_p11, %p2417_p8 }
  0x1f   :  { %v2224_v10 = vpack.c.bf16 %v925_v7, %v924_v5  ;;  %v927_v15 = vld [vmem:[#allocation2 + $0xd8] sm:$0xff]  ;;  %v944_v16 = vld [vmem:[#allocation2 + $0x160] sm:$0xff]  ;;  %v572_v47 = vld [vmem:[#allocation2 + $0x28] sm:$0xff] }
  0x20   :  { %v779_v7 = vld [vmem:[#allocation2 + $0x88] sm:$0xff] }
  0xea   :  { %v1943_v17 = vpop.f32.mrb[0].mxu0 }
  0xeb   :  { %v138_v18 = vrot.slane %v1943_v17, 7  ;;  %v145_v19 = vrot.slane %v1943_v17, 1  ;;  %v111_v20 = vpop.f32.mrb[1].mxu0 }
  0xec   :  { %v137_v21 = vrot.slane %v111_v20, 7  ;;  %v144_v22 = vrot.slane %v111_v20, 1  ;;  %1948 = vmatprep.mubr.msk.f32.mxu0 %vm155_vm1, %v111_v20  ;;  %v928_v20 = vld [vmem:[#allocation2 + $0xe0] sm:$0xff] }
  0xed   :  { %1949 = vmatmul.mubr.msk.f32.vlgmr.msra.gmra.mrb[2].mxu0 %vm155_vm1, %v1943_v17  ;;  %v945_v17 = vld [vmem:[#allocation2 + $0x168] sm:$0xff] }
  0xee   :  { %v140_v27 = vsel %vm139_vm5, %v137_v21, %v138_v18  ;;  %v147_v28 = vsel %vm146_vm6, %v144_v22, %v145_v19  ;;  %v148_v29 = vsel %vm146_vm6, %v145_v19, %v144_v22  ;;  %v141_v30 = vsel %vm139_vm5, %v138_v18, %v137_v21  ;;  %1969 = vmatprep.mubr.msk.f32.mxu0 %vm155_vm1, %v412_v36  ;;  %v929_v21 = vld [vmem:[#allocation2 + $0xe8] sm:$0xff]  ;;  %v946_v22 = vld [vmem:[#allocation2 + $0x170] sm:$0xff] }
  0xef   :  { %v142_v31 = vmul.f32 %v1695_v24, %v141_v30  ;;  %v143_v32 = vmul.f32 %v1696_v25, %v140_v27  ;;  %v149_v33 = vmul.f32 %v1697_v26, %v147_v28  ;;  %v150_v35 = vmul.f32 %v1698_v34, %v148_v29  ;;  %v947_v24 = vld [vmem:[#allocation2 + $0x178] sm:$0xff]  ;;  %v930_v27 = vld [vmem:[#allocation2 + $0xf0] sm:$0xff]  ;;  %v948_v29 = vld [vmem:[#allocation2 + $0x180] sm:$0xff] }
  0xf0   :  { %v2228_v18 = vpack.c.bf16 %v927_v15, %v926_v12  ;;  %v2230_v19 = vpack.c.bf16 %v945_v17, %v944_v16  ;;  %v2232_v25 = vpack.c.bf16 %v929_v21, %v928_v20  ;;  %v2234_v26 = vpack.c.bf16 %v947_v24, %v946_v22  ;;  %v931_v28 = vld [vmem:[#allocation2 + $0xf8] sm:$0xff]  ;;  %v949_v30 = vld [vmem:[#allocation2 + $0x188] sm:$0xff]  ;;  %v569_v36 = vld [vmem:[#allocation2 + $0x10] sm:$0xff] }
  0xf1   :  { %1955 = vmatprep.mubr.msk.f32.mxu1 %vm155_vm1, %v142_v31  ;;  %v2236_v31 = vpack.c.bf16 %v931_v28, %v930_v27  ;;  %v933_v34 = vld [vmem:[#allocation2 + $0x108] sm:$0xff]  ;;  %v782_v16 = vld [vmem:[#allocation2 + $0xa0] sm:$0xff]  ;;  %v785_v20 = vld [vmem:[#allocation2 + $0xb8] sm:$0xff]  ;;  %v516_v21 = vand.u32 15, %v2549_v14  ;;  %v514_v22 = vadd.s32 24, %v2546_v13 }
  0xf2   :  { %1956 = vmatmul.mubr.msk.f32.vlgmr.msra.gmra.mrb[0].mxu1 %vm155_vm1, %v143_v32  ;;  %v2238_v32 = vpack.c.bf16 %v949_v30, %v948_v29  ;;  %v783_v17 = vld [vmem:[#allocation2 + $0xa8] sm:$0xff]  ;;  %v950_v29 = vld [vmem:[#allocation2 + $0x190] sm:$0xff]  ;;  %v951_v30 = vld [vmem:[#allocation2 + $0x198] sm:$0xff] }
  0xf3   :  { %2169 = vmatpush3.bf16.msra.mxu1 %v2166_v11  ;;  %1962 = vmatprep.mubr.msk.f32.mxu1 %vm155_vm1, %v149_v33  ;;  %v2226_v11 = vpack.c.bf16 %v943_v9, %v942_v8  ;;  %v932_v33 = vld [vmem:[#allocation2 + $0x100] sm:$0xff]  ;;  %v780_v9 = vld [vmem:[#allocation2 + $0x90] sm:$0xff]  ;;  %vm532_vm11 = vcmp.ne.s32.totalorder %v516_v21, 15 }
  0xf4   :  { %2223 = vmatprep.subr.bf16.mxu1 %v2222_v6  ;;  %v778_v6 = vld [vmem:[#allocation2 + $0x80] sm:$0xff] }
  0xf5   :  { %v2206_v8 = vpack.c.bf16 %v779_v7, %v778_v6 }
  0xfa   :  { %1963 = vmatmul.mubr.msk.f32.vlgmr.msra.gmra.mrb[0].mxu1 %vm155_vm1, %v150_v35  ;;  %v2240_v35 = vpack.c.bf16 %v933_v34, %v932_v33  ;;  %v935_v33 = vld [vmem:[#allocation2 + $0x118] sm:$0xff] }
  0xfb   :  { %2225 = vmatpush3.bf16.msra.mxu1 %v2224_v10  ;;  %v781_v10 = vld [vmem:[#allocation2 + $0x98] sm:$0xff] }
  0xfc   :  { %2227 = vmatprep.subr.bf16.mxu1 %v2226_v11  ;;  %v2210_v12 = vpack.c.bf16 %v781_v10, %v780_v9 }
  0xff   :  { %2229 = vmatpush3.bf16.msra.mxu1 %v2228_v18  ;;  %v2214_v18 = vpack.c.bf16 %v783_v17, %v782_v16 }
 0x100   :  { %2231 = vmatprep.subr.bf16.mxu1 %v2230_v19  ;;  %v784_v19 = vld [vmem:[#allocation2 + $0xb0] sm:$0xff] }
 0x101   :  { %v2218_v24 = vpack.c.bf16 %v785_v20, %v784_v19 }
 0x103   :  { %2233 = vmatpush3.bf16.msra.mxu1 %v2232_v25  ;;  %v518_v25 = vand.u32 15, %v514_v22  ;;  %v960_v22 = vld [vmem:[#allocation2 + $0x1e0] sm:$0xff] }
 0x104   :  { %2235 = vmatprep.subr.bf16.mxu1 %v2234_v26  ;;  %v2627_v26 = vsel %vm532_vm11, 1.0, %v2469_v23 }
 0x105   :  { %vm534_vm12 = vcmp.ne.s32.totalorder %v518_v25, 15 }
 0x106   :  { %v2631_v27 = vsel %vm534_vm12, 1.0, %v2469_v23 }
 0x107   :  { %2237 = vmatpush3.bf16.msra.mxu1 %v2236_v31  ;;  %v2242_v31 = vpack.c.bf16 %v951_v30, %v950_v29  ;;  %v963_v29 = vld [vmem:[#allocation2 + $0x1f8] sm:$0xff] }
 0x108   :  { %2239 = vmatprep.subr.bf16.mxu1 %v2238_v32  ;;  %v934_v32 = vld [vmem:[#allocation2 + $0x110] sm:$0xff] }
 0x109   :  { %v2244_v34 = vpack.c.bf16 %v935_v33, %v934_v32  ;;  %v964_v32 = vld [vmem:[#allocation2 + $0x200] sm:$0xff]  ;;  %v965_v33 = vld [vmem:[#allocation2 + $0x208] sm:$0xff] }
 0x10b   :  { %2241 = vmatpush3.bf16.msra.mxu1 %v2240_v35  ;;  %v952_v35 = vld [vmem:[#allocation2 + $0x1a0] sm:$0xff] }
 0x10c   :  { %2243 = vmatprep.subr.bf16.mxu1 %v2242_v31 }
 0x10f   :  { %2245 = vmatpush3.bf16.msra.mxu1 %v2244_v34  ;;  %v2270_v34 = vpack.c.bf16 %v965_v33, %v964_v32  ;;  %v1201_v33 = vld [vmem:[#allocation2 + $0x310] sm:$0xff] }
 0x1c0   :  { %v1950_v37 = vpop.f32.mrb[2].mxu0 }
 0x1c1   :  { %v228_v38 = vpop.f32.mrb[3].mxu0 }
 0x1cd   :  { %v1964_v39 = vpop.f32.mrb[0].mxu1 }
 0x1ce   :  { %v2374_v41 = vadd.f32 %v1964_v39, %v1950_v37  ;;  %v392_v42 = vpop.f32.mrb[1].mxu1  ;;  %v570_v37 = vld [vmem:[#allocation2 + $0x18] sm:$0xff] }
 0x1cf   :  { %v2375_v43 = vadd.f32 %v392_v42, %v228_v38  ;;  %v515_v38 = vand.u32 15, %v2546_v13 }
 0x1d0   :  { %v409_v44 = vadd.f32 %v2374_v41, %v1705_v40 }
 0x1d1   :  { %v408_v45 = vadd.f32 %v2375_v43, %v1705_v40  ;;  %v2194_v43 = vpack.c.bf16 %v570_v37, %v569_v36  ;;  %vm519_vm9 = vcmp.ne.s32.totalorder %v515_v38, 0  ;;  %v953_v36 = vld [vmem:[#allocation2 + $0x1a8] sm:$0xff]  ;;  %v936_v38 = vld [vmem:[#allocation2 + $0x120] sm:$0xff] }
 0x1d2   :  { %v411_v46 = vmax.f32 %v409_v44, 0.0  ;;  %v2246_v37 = vpack.c.bf16 %v953_v36, %v952_v35  ;;  %v966_v35 = vld [vmem:[#allocation2 + $0x210] sm:$0xff]  ;;  %v967_v36 = vld [vmem:[#allocation2 + $0x218] sm:$0xff] }
 0x1d3   :  { %v410_v49 = vmax.f32 %v408_v45, 0.0 }
 0x1d4   :  { %2247 = vmatprep.subr.bf16.mxu1 %v2246_v37  ;;  %v2274_v37 = vpack.c.bf16 %v967_v36, %v966_v35  ;;  %v1185_v36 = vld [vmem:[#allocation2 + $0x290] sm:$0xff] }
 0x1d5   :  { %v2170_v50 = vpack.c.bf16 %v411_v46, %v410_v49  ;;  %v571_v46 = vld [vmem:[#allocation2 + $0x20] sm:$0xff] }
 0x1d7   :  { %2171 = vmatprep.subr.bf16.mxu0 %v2170_v50 }
 0x1d8   :  { %2173 = vmatpush3.bf16.msra.mxu0 %v2170_v50 }
 0x1d9   :  { %2175 = vmatprep.subr.bf16.mxu0 %v2174_v51 }
 0x1db   :  { %1970 = vmatmul.mubr.msk.f32.vlgmr.msra.gmra.mrb[4].mxu0 %vm155_vm1, %v413_v54 }
 0x1dc   :  { %1972 = vmatprep.mubr.msk.f32.mxu0 %vm155_vm1, %v414_v55  ;;  %2177 = vmatpush3.bf16.msra.mxu0 %v2174_v51  ;;  %v2198_v55 = vpack.c.bf16 %v572_v47, %v571_v46  ;;  %v956_v47 = vld [vmem:[#allocation2 + $0x1c0] sm:$0xff] }
 0x1dd   :  { %2179 = vmatprep.subr.bf16.mxu0 %v2178_v56 }
 0x1df   :  { %1973 = vmatmul.mubr.msk.f32.gmra.mrb[6].mxu0 %vm155_vm1, %v415_v59  ;;  %v573_v59 = vld [vmem:[#allocation2 + $0x30] sm:$0xff] }
 0x1e0   :  { %2181 = vmatpush3.bf16.msra.mxu0 %v2178_v56  ;;  %v2598_v56 = vsel %vm519_vm9, 1.0, %v2469_v23 }
 0x1e1   :  { %2183 = vmatprep.subr.bf16.mxu0 %v2182_v60 }
 0x1e4   :  { %2185 = vmatpush3.bf16.msra.mxu0 %v2182_v60  ;;  %v574_v60 = vld [vmem:[#allocation2 + $0x38] sm:$0xff] }
 0x1e5   :  { %2187 = vmatprep.subr.bf16.mxu0 %v2186_v63  ;;  %v2202_v4 = vpack.c.bf16 %v574_v60, %v573_v59 }
 0x1e8   :  { %2189 = vmatpush3.bf16.msra.mxu0 %v2186_v63  ;;  %v517_v63 = vand.u32 15, %v513_v48  ;;  %v957_v48 = vld [vmem:[#allocation2 + $0x1c8] sm:$0xff] }
 0x1e9   :  { %2191 = vmatprep.subr.bf16.mxu0 %v2190_v2 }
 0x1ea   :  { %vm521_vm10 = vcmp.ne.s32.totalorder %v517_v63, 0 }
 0x1eb   :  { %v2617_v11 = vsel %vm521_vm10, 1.0, %v2469_v23 }
 0x2ae   :  { %v1971_v39 = vpop.f32.mrb[4].mxu0 }
 0x2af   :  { %v544_v40 = vrot.slane %v1971_v39, 7  ;;  %v556_v41 = vrot.slane %v1971_v39, 1  ;;  %v494_v42 = vpop.f32.mrb[5].mxu0 }
 0x2b0   :  { %v543_v44 = vrot.slane %v494_v42, 7  ;;  %v555_v45 = vrot.slane %v494_v42, 1  ;;  %1991 = vmatprep.mubr.msk.f32.mxu0 %vm583_vm8, %v494_v42  ;;  %v955_v42 = vld [vmem:[#allocation2 + $0x1b8] sm:$0xff] }
 0x2b1   :  { %1992 = vmatmul.mubr.msk.f32.vlgmr.msra.gmra.mrb[8].mxu0 %vm583_vm8, %v1971_v39  ;;  %v937_v39 = vld [vmem:[#allocation2 + $0x128] sm:$0xff] }
 0x2b2   :  { %v549_v49 = vsel %vm139_vm5, %v543_v44, %v544_v40  ;;  %2193 = vmatpush3.bf16.msra.mxu0 %v2190_v2  ;;  %v1974_v50 = vpop.f32.mrb[6].mxu0  ;;  %v561_v51 = vsel %vm146_vm6, %v555_v45, %v556_v41 }
 0x2b3   :  { %v546_v52 = vrot.slane %v1974_v50, 7  ;;  %v558_v53 = vrot.slane %v1974_v50, 1  ;;  %v504_v54 = vpop.f32.mrb[7].mxu0  ;;  %2195 = vmatprep.subr.bf16.mxu0 %v2194_v43 }
 0x2b4   :  { %v545_v57 = vrot.slane %v504_v54, 7  ;;  %v557_v58 = vrot.slane %v504_v54, 1  ;;  %1994 = vmatprep.mubr.msk.f32.mxu0 %vm583_vm8, %v504_v54 }
 0x2b5   :  { %v550_v61 = vsel %vm139_vm5, %v546_v52, %v543_v44  ;;  %v562_v62 = vsel %vm146_vm6, %v558_v53, %v555_v45  ;;  %1995 = vmatmul.mubr.msk.f32.gmra.mrb[10].mxu0 %vm583_vm8, %v1974_v50  ;;  %v938_v44 = vld [vmem:[#allocation2 + $0x130] sm:$0xff]  ;;  %v939_v45 = vld [vmem:[#allocation2 + $0x138] sm:$0xff]  ;;  %v1726_v50 = vld [vmem:[#allocation2 + $0x3c1] ss:$0 sm:$0xff] }
 0x2b6   :  { %v548_v0 = vsel %vm139_vm5, %v544_v40, %v545_v57  ;;  %v560_v1 = vsel %vm146_vm6, %v556_v41, %v557_v58  ;;  %2197 = vmatpush3.bf16.msra.mxu0 %v2194_v43  ;;  %v551_v2 = vmul.f32 %v2598_v56, %v550_v61  ;;  %v547_v3 = vsel %vm139_vm5, %v545_v57, %v546_v52  ;;  %v954_v41 = vld [vmem:[#allocation2 + $0x1b0] sm:$0xff] }
 0x2b7   :  { %2199 = vmatprep.subr.bf16.mxu0 %v2198_v55  ;;  %v559_v5 = vsel %vm146_vm6, %v557_v58, %v558_v53  ;;  %v553_v15 = vmul.f32 %v2617_v11, %v548_v0  ;;  %v564_v14 = vmul.f32 %v2627_v26, %v560_v1  ;;  %v566_v28 = vmul.f32 %v2631_v27, %v562_v62 }
 0x2b8   :  { %2013 = vmatprep.mubr.msk.f32.mxu0 %vm583_vm8, %v551_v2  ;;  %v2248_v40 = vpack.c.bf16 %v937_v39, %v936_v38  ;;  %v2250_v43 = vpack.c.bf16 %v955_v42, %v954_v41  ;;  %v2252_v46 = vpack.c.bf16 %v939_v45, %v938_v44  ;;  %v968_v38 = vld [vmem:[#allocation2 + $0x220] sm:$0xff]  ;;  %v969_v39 = vld [vmem:[#allocation2 + $0x228] sm:$0xff]  ;;  %v970_v41 = vld [vmem:[#allocation2 + $0x230] sm:$0xff] }
 0x2b9   :  { %v971_v42 = vld [vmem:[#allocation2 + $0x238] sm:$0xff] }
 0x2ba   :  { %2201 = vmatpush3.bf16.msra.mxu0 %v2198_v55  ;;  %2249 = vmatpush3.bf16.msra.mxu1 %v2248_v40  ;;  %v2278_v40 = vpack.c.bf16 %v969_v39, %v968_v38  ;;  %v1217_v38 = vld [vmem:[#allocation2 + $0x390] sm:$0xff] }
 0x2bb   :  { %2203 = vmatprep.subr.bf16.mxu0 %v2202_v4  ;;  %2251 = vmatprep.subr.bf16.mxu1 %v2250_v43  ;;  %v2282_v43 = vpack.c.bf16 %v971_v42, %v970_v41  ;;  %v1203_v42 = vld [vmem:[#allocation2 + $0x320] sm:$0xff] }
 0x2be   :  { %2205 = vmatpush3.bf16.msra.mxu0 %v2202_v4  ;;  %2253 = vmatpush3.bf16.msra.mxu1 %v2252_v46  ;;  %v958_v4 = vld [vmem:[#allocation2 + $0x1d0] sm:$0xff]  ;;  %v1191_v46 = vld [vmem:[#allocation2 + $0x2c0] sm:$0xff] }
 0x2bf   :  { %2207 = vmatprep.subr.bf16.mxu0 %v2206_v8 }
 0x2c1   :  { %2014 = vmatmul.mubr.msk.f32.vlgmr.msra.gmra.mrb[8].mxu0 %vm583_vm8, %v549_v49  ;;  %v2254_v49 = vpack.c.bf16 %v957_v48, %v956_v47  ;;  %v1192_v47 = vld [vmem:[#allocation2 + $0x2c8] sm:$0xff] }
 0x2c2   :  { %2016 = vmatprep.mubr.msk.f32.mxu0 %vm583_vm8, %v553_v15  ;;  %2209 = vmatpush3.bf16.msra.mxu0 %v2206_v8  ;;  %v2286_v48 = vpack.c.bf16 %v1192_v47, %v1191_v46  ;;  %v1188_v46 = vld [vmem:[#allocation2 + $0x2a8] sm:$0xff]  ;;  %v1219_v47 = vld [vmem:[#allocation2 + $0x3a0] sm:$0xff] }
 0x2c3   :  { %2211 = vmatprep.subr.bf16.mxu0 %v2210_v12  ;;  %2255 = vmatprep.subr.bf16.mxu1 %v2254_v49 }
 0x2c5   :  { %2017 = vmatmul.mubr.msk.f32.gmra.mrb[10].mxu0 %vm583_vm8, %v547_v3 }
 0x2c6   :  { %2213 = vmatpush3.bf16.msra.mxu0 %v2210_v12  ;;  %2035 = vmatprep.mubr.msk.f32.mxu0 %vm583_vm8, %v561_v51 }
 0x2c7   :  { %2215 = vmatprep.subr.bf16.mxu0 %v2214_v18 }
 0x2ca   :  { %2217 = vmatpush3.bf16.msra.mxu0 %v2214_v18 }
 0x2cb   :  { %2219 = vmatprep.subr.bf16.mxu0 %v2218_v24 }
 0x2ce   :  { %2221 = vmatpush3.bf16.msra.mxu0 %v2218_v24  ;;  %v961_v24 = vld [vmem:[#allocation2 + $0x1e8] sm:$0xff] }
 0x2cf   :  { %2287 = vmatprep.subr.bf16.mxu0 %v2286_v48 }
 0x2d1   :  { %2036 = vmatmul.mubr.msk.f32.vlgmr.msra.gmra.mrb[8].mxu0 %vm583_vm8, %v564_v14  ;;  %v2262_v14 = vpack.c.bf16 %v961_v24, %v960_v22 }
 0x2d2   :  { %2038 = vmatprep.mubr.msk.f32.mxu0 %vm583_vm8, %v559_v5  ;;  %v959_v5 = vld [vmem:[#allocation2 + $0x1d8] sm:$0xff] }
 0x2d3   :  { %v2258_v16 = vpack.c.bf16 %v959_v5, %v958_v4  ;;  %v1180_v5 = vld [vmem:[#allocation2 + $0x268] sm:$0xff] }
 0x2d5   :  { %2039 = vmatmul.mubr.msk.f32.gmra.mrb[10].mxu0 %vm583_vm8, %v566_v28  ;;  %v962_v28 = vld [vmem:[#allocation2 + $0x1f0] sm:$0xff] }
 0x2d6   :  { %v2266_v31 = vpack.c.bf16 %v963_v29, %v962_v28  ;;  %v1183_v29 = vld [vmem:[#allocation2 + $0x280] sm:$0xff] }
 0x3a4   :  { %v2037_v51 = vpop.f32.mrb[8].mxu0 }
 0x3a5   :  { %v893_v52 = vadd.f32 %v2037_v51, %v1726_v50  ;;  %v864_v53 = vpop.f32.mrb[9].mxu0  ;;  %v1207_v51 = vld [vmem:[#allocation2 + $0x340] sm:$0xff] }
 0x3a6   :  { %v892_v54 = vadd.f32 %v1726_v50, %v864_v53  ;;  %v1208_v53 = vld [vmem:[#allocation2 + $0x348] sm:$0xff] }
 0x3a7   :  { %v897_v55 = vmax.f32 %v893_v52, 0.0 }
 0x3a8   :  { %v896_v57 = vmax.f32 %v892_v54, 0.0  ;;  %v2040_v58 = vpop.f32.mrb[10].mxu0  ;;  %v2318_v54 = vpack.c.bf16 %v1208_v53, %v1207_v51  ;;  %v1205_v51 = vld [vmem:[#allocation2 + $0x330] sm:$0xff] }
 0x3a9   :  { %v901_v59 = vrot.slane %v897_v55, 7  ;;  %v913_v60 = vrot.slane %v897_v55, 1  ;;  %v895_v61 = vadd.f32 %v2040_v58, %v1726_v50  ;;  %v874_v62 = vpop.f32.mrb[11].mxu0  ;;  %v1177_v58 = vld [vmem:[#allocation2 + $0x250] sm:$0xff] }
 0x3aa   :  { %v900_v63 = vrot.slane %v896_v57, 7  ;;  %v912_v0 = vrot.slane %v896_v57, 1  ;;  %v894_v1 = vadd.f32 %v1726_v50, %v874_v62  ;;  %1041 = vmatprep.mubr.f32.mxu1 %v896_v57  ;;  %v1176_v50 = vld [vmem:[#allocation2 + $0x248] sm:$0xff]  ;;  %v1194_v57 = vld [vmem:[#allocation2 + $0x2d8] sm:$0xff] }
 0x3ab   :  { %v899_v2 = vmax.f32 %v895_v61, 0.0  ;;  %v1209_v61 = vld [vmem:[#allocation2 + $0x350] sm:$0xff]  ;;  %v1210_v62 = vld [vmem:[#allocation2 + $0x358] sm:$0xff] }
 0x3ac   :  { %v898_v3 = vmax.f32 %v894_v1, 0.0  ;;  %v906_v6 = vsel %vm139_vm5, %v900_v63, %v901_v59  ;;  %v918_v7 = vsel %vm146_vm6, %v912_v0, %v913_v60  ;;  %v1195_v1 = vld [vmem:[#allocation2 + $0x2e0] sm:$0xff] }
 0x3ad   :  { %v903_v8 = vrot.slane %v899_v2, 7  ;;  %v915_v9 = vrot.slane %v899_v2, 1 }
 0x3ae   :  { %v902_v10 = vrot.slane %v898_v3, 7  ;;  %v914_v12 = vrot.slane %v898_v3, 1 }
 0x3af   :  { %v907_v15 = vsel %vm139_vm5, %v903_v8, %v900_v63  ;;  %v919_v17 = vsel %vm146_vm6, %v915_v9, %v912_v0  ;;  %v2322_v0 = vpack.c.bf16 %v1210_v62, %v1209_v61  ;;  %v2470_v61 = vmov 0.0|0.0  }
 0x3b0   :  { %v917_v18 = vsel %vm146_vm6, %v913_v60, %v914_v12  ;;  %v908_v19 = vmul.f32 %v2598_v56, %v907_v15  ;;  %v905_v20 = vsel %vm139_vm5, %v901_v59, %v902_v10  ;;  %v904_v21 = vsel %vm139_vm5, %v902_v10, %v903_v8  ;;  %v1178_v60 = vld [vmem:[#allocation2 + $0x258] sm:$0xff]  ;;  %v1213_v15 = vld [vmem:[#allocation2 + $0x370] sm:$0xff] }
 0x3b1   :  { %v916_v25 = vsel %vm146_vm6, %v914_v12, %v915_v9  ;;  %v910_v30 = vmul.f32 %v2617_v11, %v905_v20  ;;  %v921_v44 = vmul.f32 %v2627_v26, %v917_v18  ;;  %v923_v45 = vmul.f32 %v2631_v27, %v919_v17  ;;  %v1197_v9 = vld [vmem:[#allocation2 + $0x2f0] sm:$0xff]  ;;  %v1198_v10 = vld [vmem:[#allocation2 + $0x2f8] sm:$0xff]  ;;  %v1199_v20 = vld [vmem:[#allocation2 + $0x300] sm:$0xff] }
 0x3b2   :  { %1042 = vmatmul.mubr.f32.vlgmr.msra.gmra.mrb[2].mxu1 %v908_v19  ;;  %v2292_v63 = vpack.c.bf16 %v1178_v60, %v1177_v58  ;;  %v2298_v17 = vpack.c.bf16 %v1198_v10, %v1197_v9  ;;  %v1181_v18 = vld [vmem:[#allocation2 + $0x270] sm:$0xff]  ;;  %v1182_v19 = vld [vmem:[#allocation2 + $0x278] sm:$0xff]  ;;  %v1727_v10 = vld [vmem:[#allocation2 + $0x3c2] ss:$0 sm:$0xff] }
 0x3b3   :  { %2257 = vmatpush3.bf16.msra.mxu1 %v2254_v49  ;;  %1046 = vmatprep.mubr.f32.mxu1 %v897_v55  ;;  %v1175_v49 = vld [vmem:[#allocation2 + $0x240] sm:$0xff]  ;;  %v1193_v55 = vld [vmem:[#allocation2 + $0x2d0] sm:$0xff]  ;;  %v2300_v24 = vpack.c.bf16 %v1182_v19, %v1181_v18 }
 0x3b4   :  { %2259 = vmatprep.subr.bf16.mxu1 %v2258_v16  ;;  %v2288_v52 = vpack.c.bf16 %v1176_v50, %v1175_v49  ;;  %v2290_v59 = vpack.c.bf16 %v1194_v57, %v1193_v55  ;;  %v1220_v49 = vld [vmem:[#allocation2 + $0x3a8] sm:$0xff]  ;;  %v1190_v55 = vld [vmem:[#allocation2 + $0x2b8] sm:$0xff]  ;;  %v1221_v57 = vld [vmem:[#allocation2 + $0x3b0] sm:$0xff] }
 0x3b5   :  { %v2342_v50 = vpack.c.bf16 %v1220_v49, %v1219_v47 }
 0x3b6   :  { %1047 = vmatmul.mubr.f32.gmra.mrb[4].mxu1 %v906_v6  ;;  %2289 = vmatpush3.bf16.msra.mxu0 %v2288_v52  ;;  %v1211_v6 = vld [vmem:[#allocation2 + $0x360] sm:$0xff]  ;;  %v1206_v52 = vld [vmem:[#allocation2 + $0x338] sm:$0xff] }
 0x3b7   :  { %2261 = vmatpush3.bf16.msra.mxu1 %v2258_v16  ;;  %1051 = vmatprep.mubr.f32.mxu1 %v898_v3  ;;  %v1179_v3 = vld [vmem:[#allocation2 + $0x260] sm:$0xff]  ;;  %v1214_v16 = vld [vmem:[#allocation2 + $0x378] sm:$0xff]  ;;  %v2314_v53 = vpack.c.bf16 %v1206_v52, %v1205_v51  ;;  %v1409_v51 = vld [vmem:[%s2786_s3 + $0x70] sm:$0xff] }
 0x3b8   :  { %2263 = vmatprep.subr.bf16.mxu1 %v2262_v14  ;;  %2291 = vmatprep.subr.bf16.mxu0 %v2290_v59  ;;  %v2296_v12 = vpack.c.bf16 %v1180_v5, %v1179_v3  ;;  %v2330_v22 = vpack.c.bf16 %v1214_v16, %v1213_v15  ;;  %v1222_v59 = vld [vmem:[#allocation2 + $0x3b8] sm:$0xff] }
 0x3b9   :  { %v2346_v60 = vpack.c.bf16 %v1222_v59, %v1221_v57  ;;  %v1410_v52 = vld [vmem:[%s2786_s3 + $0x78] sm:$0xff]  ;;  %v1412_v57 = vld [vmem:[%s2786_s3 + $0x88] sm:$0xff] }
 0x3ba   :  { %1052 = vmatmul.mubr.f32.gmra.mrb[6].mxu1 %v910_v30  ;;  %2293 = vmatpush3.bf16.msra.mxu0 %v2292_v63  ;;  %v1184_v30 = vld [vmem:[#allocation2 + $0x288] sm:$0xff]  ;;  %v1414_v59 = vld [vmem:[%s2786_s3 + $0x98] sm:$0xff] }
 0x3bb   :  { %2265 = vmatpush3.bf16.msra.mxu1 %v2262_v14  ;;  %1056 = vmatprep.mubr.f32.mxu1 %v899_v2  ;;  %v1196_v2 = vld [vmem:[#allocation2 + $0x2e8] sm:$0xff]  ;;  %v2304_v32 = vpack.c.bf16 %v1184_v30, %v1183_v29 }
 0x3bc   :  { %2267 = vmatprep.subr.bf16.mxu1 %v2266_v31  ;;  %v2294_v4 = vpack.c.bf16 %v1196_v2, %v1195_v1  ;;  %v1216_v14 = vld [vmem:[#allocation2 + $0x388] sm:$0xff] }
 0x3be   :  { %1057 = vmatmul.mubr.f32.gmra.mrb[8].mxu1 %v904_v21  ;;  %2295 = vmatprep.subr.bf16.mxu0 %v2294_v4  ;;  %v1200_v21 = vld [vmem:[#allocation2 + $0x308] sm:$0xff] }
 0x3bf   :  { %2269 = vmatpush3.bf16.msra.mxu1 %v2266_v31  ;;  %2073 = vmatprep.mubr.f32.mxu1 %v918_v7  ;;  %v1212_v7 = vld [vmem:[#allocation2 + $0x368] sm:$0xff]  ;;  %v2302_v28 = vpack.c.bf16 %v1200_v21, %v1199_v20 }
 0x3c0   :  { %2271 = vmatprep.subr.bf16.mxu1 %v2270_v34  ;;  %v2326_v8 = vpack.c.bf16 %v1212_v7, %v1211_v6  ;;  %2297 = vmatpush3.bf16.msra.mxu0 %v2296_v12 }
 0x3c1   :  { %2299 = vmatprep.subr.bf16.mxu0 %v2298_v17 }
 0x3c3   :  { %2273 = vmatpush3.bf16.msra.mxu1 %v2270_v34  ;;  %v1202_v34 = vld [vmem:[#allocation2 + $0x318] sm:$0xff] }
 0x3c4   :  { %2275 = vmatprep.subr.bf16.mxu1 %v2274_v37  ;;  %2301 = vmatpush3.bf16.msra.mxu0 %v2300_v24  ;;  %v2306_v35 = vpack.c.bf16 %v1202_v34, %v1201_v33 }
 0x3c5   :  { %2303 = vmatprep.subr.bf16.mxu0 %v2302_v28 }
 0x3c7   :  { %2277 = vmatpush3.bf16.msra.mxu1 %v2274_v37  ;;  %v1186_v37 = vld [vmem:[#allocation2 + $0x298] sm:$0xff] }
 0x3c8   :  { %2279 = vmatprep.subr.bf16.mxu1 %v2278_v40  ;;  %2305 = vmatpush3.bf16.msra.mxu0 %v2304_v32  ;;  %v2308_v39 = vpack.c.bf16 %v1186_v37, %v1185_v36 }
 0x3c9   :  { %2307 = vmatprep.subr.bf16.mxu0 %v2306_v35 }
 0x3cb   :  { %2281 = vmatpush3.bf16.msra.mxu1 %v2278_v40  ;;  %v1218_v40 = vld [vmem:[#allocation2 + $0x398] sm:$0xff] }
 0x3cc   :  { %2283 = vmatprep.subr.bf16.mxu1 %v2282_v43  ;;  %v2338_v41 = vpack.c.bf16 %v1218_v40, %v1217_v38  ;;  %2309 = vmatpush3.bf16.msra.mxu0 %v2308_v39  ;;  %v1407_v40 = vld [vmem:[%s2786_s3 + $0x60] sm:$0xff] }
 0x3cf   :  { %2285 = vmatpush3.bf16.msra.mxu1 %v2282_v43  ;;  %v1204_v43 = vld [vmem:[#allocation2 + $0x328] sm:$0xff] }
 0x3d0   :  { %2319 = vmatprep.subr.bf16.mxu1 %v2318_v54 }
 0x3d2   :  { %2074 = vmatmul.mubr.f32.vlgmr.msra.gmra.mrb[10].mxu1 %v921_v44  ;;  %v2310_v44 = vpack.c.bf16 %v1204_v43, %v1203_v42 }
 0x3d3   :  { %2076 = vmatprep.mubr.f32.mxu1 %v916_v25  ;;  %2321 = vmatpush3.bf16.msra.mxu1 %v2318_v54  ;;  %v1215_v25 = vld [vmem:[#allocation2 + $0x380] sm:$0xff]  ;;  %v1189_v54 = vld [vmem:[#allocation2 + $0x2b0] sm:$0xff] }
 0x3d4   :  { %2323 = vmatprep.subr.bf16.mxu1 %v2322_v0  ;;  %v2334_v31 = vpack.c.bf16 %v1216_v14, %v1215_v25  ;;  %2311 = vmatprep.subr.bf16.mxu0 %v2310_v44  ;;  %v2316_v58 = vpack.c.bf16 %v1190_v55, %v1189_v54  ;;  %v1411_v55 = vld [vmem:[%s2786_s3 + $0x80] sm:$0xff] }
 0x3d6   :  { %2077 = vmatmul.mubr.f32.gmra.mrb[12].mxu1 %v923_v45  ;;  %v1187_v45 = vld [vmem:[#allocation2 + $0x2a0] sm:$0xff] }
 0x3d7   :  { %2325 = vmatpush3.bf16.msra.mxu1 %v2322_v0  ;;  %v2312_v48 = vpack.c.bf16 %v1188_v46, %v1187_v45 }
 0x3d8   :  { %2327 = vmatprep.subr.bf16.mxu1 %v2326_v8 }
 0x3d9   :  { %2313 = vmatpush3.bf16.msra.mxu0 %v2312_v48 }
 0x3da   :  { %2315 = vmatprep.subr.bf16.mxu0 %v2314_v53 }
 0x3db   :  { %2329 = vmatpush3.bf16.msra.mxu1 %v2326_v8 }
 0x3dc   :  { %2331 = vmatprep.subr.bf16.mxu1 %v2330_v22 }
 0x3dd   :  { %2317 = vmatpush3.bf16.msra.mxu0 %v2316_v58  ;;  %v2357_v58 = vpack.c.bf16 %v1412_v57, %v1411_v55 }
 0x3de   :  { %2350 = vmatprep.subr.bf16.mxu0 %v2470_v61 }
 0x3df   :  { %2333 = vmatpush3.bf16.msra.mxu1 %v2330_v22 }
 0x3e0   :  { %2335 = vmatprep.subr.bf16.mxu1 %v2334_v31 }
 0x3e3   :  { %2337 = vmatpush3.bf16.msra.mxu1 %v2334_v31 }
 0x3e4   :  { %2339 = vmatprep.subr.bf16.mxu1 %v2338_v41 }
 0x3e7   :  { %2341 = vmatpush3.bf16.msra.mxu1 %v2338_v41  ;;  %v1408_v41 = vld [vmem:[%s2786_s3 + $0x68] sm:$0xff] }
 0x3e8   :  { %2343 = vmatprep.subr.bf16.mxu1 %v2342_v50  ;;  %v2351_v48 = vpack.c.bf16 %v1408_v41, %v1407_v40  ;;  %v1580_v40 = vld [vmem:[%s2786_s3 + $0xd0] sm:$0xff]  ;;  %v1581_v41 = vld [vmem:[%s2786_s3 + $0xd8] sm:$0xff] }
 0x3eb   :  { %2345 = vmatpush3.bf16.msra.mxu1 %v2342_v50 }
 0x3ec   :  { %2347 = vmatprep.subr.bf16.mxu1 %v2346_v60 }
 0x3ef   :  { %2349 = vmatpush3.bf16.msra.mxu1 %v2346_v60 }
 0x3f0   :  { %2368 = vmatprep.subr.bf16.mxu1 %v2470_v61 }
 0x485   :  { %v1824_v62 = vpop.f32.mrb[2].mxu1 }
 0x486   :  { %v1825_v63 = vpop.f32.mrb[3].mxu1 }
 0x487   :  { %v1826_v0 = vadd.f32 %v1825_v63, %v1824_v62  ;;  %v1494_v62 = vld [vmem:[%s2786_s3 + $0xa0] sm:$0xff]  ;;  %v1495_v63 = vld [vmem:[%s2786_s3 + $0xa8] sm:$0xff] }
 0x489   :  { %v1827_v1 = vpop.f32.mrb[4].mxu1  ;;  %v1044_v16 = vadd.f32 %v1826_v0, %v1727_v10  ;;  %v2363_v0 = vpack.c.bf16 %v1495_v63, %v1494_v62 }
 0x48a   :  { %v1828_v2 = vpop.f32.mrb[5].mxu1 }
 0x48b   :  { %v1829_v3 = vadd.f32 %v1828_v2, %v1827_v1  ;;  %v1496_v1 = vld [vmem:[%s2786_s3 + $0xb0] sm:$0xff] }
 0x48d   :  { %v1830_v4 = vpop.f32.mrb[6].mxu1  ;;  %v1049_v12 = vadd.f32 %v1829_v3, %v1727_v10  ;;  %v1578_v3 = vld [vmem:[%s2786_s3 + $0xc0] sm:$0xff] }
 0x48e   :  { %v1831_v5 = vpop.f32.mrb[7].mxu1 }
 0x48f   :  { %v1832_v6 = vadd.f32 %v1831_v5, %v1830_v4  ;;  %v1579_v4 = vld [vmem:[%s2786_s3 + $0xc8] sm:$0xff] }
 0x490   :  { %v2369_v5 = vpack.c.bf16 %v1579_v4, %v1578_v3 }
 0x491   :  { %v1833_v7 = vpop.f32.mrb[8].mxu1  ;;  %v1054_v25 = vadd.f32 %v1832_v6, %v1727_v10 }
 0x492   :  { %v1834_v8 = vpop.f32.mrb[9].mxu1 }
 0x493   :  { %v1835_v9 = vadd.f32 %v1834_v8, %v1833_v7 }
 0x495   :  { %v1059_v21 = vadd.f32 %v1835_v9, %v1727_v10 }
 0x4a5   :  { %v2075_v15 = vpop.f32.mrb[10].mxu1 }
 0x4a6   :  { %v1134_v17 = vadd.f32 %v2075_v15, %v1049_v12  ;;  %v1128_v18 = vpop.f32.mrb[11].mxu1  ;;  %v1728_v12 = vld [vmem:[#allocation2 + $0x3c3] ss:$0 sm:$0xff] }
 0x4a7   :  { %v1129_v19 = vadd.f32 %v1128_v18, %v1044_v16 }
 0x4a8   :  { %v1148_v20 = vmax.f32 %v1134_v17, 0.0 }
 0x4a9   :  { %v1147_v22 = vmax.f32 %v1129_v19, 0.0  ;;  %v2078_v24 = vpop.f32.mrb[12].mxu1 }
 0x4aa   :  { %v1152_v14 = vrot.slane %v1148_v20, 7  ;;  %v1164_v28 = vrot.slane %v1148_v20, 1  ;;  %v1144_v29 = vadd.f32 %v2078_v24, %v1059_v21  ;;  %v1138_v30 = vpop.f32.mrb[13].mxu1 }
 0x4ab   :  { %v1151_v31 = vrot.slane %v1147_v22, 7  ;;  %v1163_v32 = vrot.slane %v1147_v22, 1  ;;  %v1139_v33 = vadd.f32 %v1138_v30, %v1054_v25  ;;  %1287 = vmatprep.mubr.f32.mxu0 %v1147_v22 }
 0x4ac   :  { %v1150_v34 = vmax.f32 %v1144_v29, 0.0 }
 0x4ad   :  { %v1149_v35 = vmax.f32 %v1139_v33, 0.0  ;;  %v1169_v36 = vsel %vm146_vm6, %v1163_v32, %v1164_v28  ;;  %v1157_v37 = vsel %vm139_vm5, %v1151_v31, %v1152_v14  ;;  %v1729_v33 = vld [vmem:[%s2786_s3 + $0xe0] ss:$0 sm:$0xff] }
 0x4ae   :  { %v1154_v38 = vrot.slane %v1150_v34, 7  ;;  %v1166_v39 = vrot.slane %v1150_v34, 1  ;;  %2111 = vmatprep.mubr.f32.mxu1 %v1169_v36 }
 0x4af   :  { %v1153_v42 = vrot.slane %v1149_v35, 7  ;;  %v1165_v43 = vrot.slane %v1149_v35, 1 }
 0x4b0   :  { %v1158_v44 = vsel %vm139_vm5, %v1154_v38, %v1151_v31  ;;  %v1170_v45 = vsel %vm146_vm6, %v1166_v39, %v1163_v32 }
 0x4b1   :  { %v1159_v46 = vmul.f32 %v2598_v56, %v1158_v44  ;;  %v1168_v47 = vsel %vm146_vm6, %v1164_v28, %v1165_v43  ;;  %v1167_v49 = vsel %vm146_vm6, %v1165_v43, %v1166_v39  ;;  %v1156_v56 = vsel %vm139_vm5, %v1152_v14, %v1153_v42  ;;  %v1731_v43 = vld [vmem:[%s2786_s3 + $0xe1] ss:$0 sm:$0xff] }
 0x4b2   :  { %v1172_v50 = vmul.f32 %v2627_v26, %v1168_v47  ;;  %v1155_v53 = vsel %vm139_vm5, %v1153_v42, %v1154_v38  ;;  %v2354_v26 = vpack.c.bf16 %v1410_v52, %v1409_v51  ;;  %v1174_v54 = vmul.f32 %v2631_v27, %v1170_v45  ;;  %v1413_v27 = vld [vmem:[%s2786_s3 + $0x90] sm:$0xff] }
 0x4b3   :  { %1288 = vmatmul.mubr.f32.vlgmr.msra.gmra.mrb[12].mxu0 %v1159_v46  ;;  %v1161_v13 = vmul.f32 %v2617_v11, %v1156_v56  ;;  %v2360_v60 = vpack.c.bf16 %v1414_v59, %v1413_v27  ;;  %v1406_v11 = vld [vmem:[%s2784_s1] sm:$0x3]  ;;  %v2372_v42 = vpack.c.bf16 %v1581_v41, %v1580_v40 }
 0x4b4   :  { %1292 = vmatprep.mubr.f32.mxu0 %v1148_v20  ;;  %2112 = vmatmul.mubr.f32.vlgmr.msra.gmra.mrb[14].mxu1 %v1172_v50 }
 0x4b5   :  { %2352 = vmatpush3.bf16.msra.mxu0 %v2351_v48  ;;  %2114 = vmatprep.mubr.f32.mxu1 %v1167_v49 }
 0x4b6   :  { %2353 = vmatprep.subr.bf16.mxu0 %v2470_v61  ;;  %2370 = vmatpush3.bf16.msra.mxu1 %v2369_v5 }
 0x4b7   :  { %1293 = vmatmul.mubr.f32.gmra.mrb[14].mxu0 %v1157_v37  ;;  %2371 = vmatprep.subr.bf16.mxu1 %v2470_v61 }
 0x4b8   :  { %1297 = vmatprep.mubr.f32.mxu0 %v1149_v35  ;;  %2115 = vmatmul.mubr.f32.gmra.mrb[16].mxu1 %v1174_v54 }
 0x4b9   :  { %2355 = vmatpush3.bf16.msra.mxu0 %v2354_v26  ;;  %2155 = vmatprep.mubr.msk.f32.mxu1 %vm2471_vm13, %v2469_v23 }
 0x4ba   :  { %2356 = vmatprep.subr.bf16.mxu0 %v2470_v61  ;;  %2373 = vmatpush3.bf16.msra.mxu1 %v2372_v42 }
 0x4bb   :  { %1298 = vmatmul.mubr.f32.gmra.mrb[16].mxu0 %v1161_v13 }
 0x4bc   :  { %1302 = vmatprep.mubr.f32.mxu0 %v1150_v34 }
 0x4bd   :  { %2358 = vmatpush3.bf16.msra.mxu0 %v2357_v58 }
 0x4be   :  { %2359 = vmatprep.subr.bf16.mxu0 %v2470_v61 }
 0x4bf   :  { %1303 = vmatmul.mubr.f32.gmra.mrb[18].mxu0 %v1155_v53 }
 0x4c0   :  { %2133 = vmatprep.mubr.msk.f32.mxu0 %vm2471_vm13, %v2469_v23 }
 0x4c1   :  { %2361 = vmatpush3.bf16.msra.mxu0 %v2360_v60 }
 0x4c2   :  { %2362 = vmatprep.subr.bf16.mxu0 %v2470_v61 }
 0x4c4   :  { %2134 = vmatmul.mubr.msk.f32.vlgmr.msra.gmra.mrb[20].mxu0 %vm583_vm8, %v1406_v11 }
 0x4c5   :  { %2144 = vmatprep.mubr.msk.f32.mxu0 %vm2471_vm13, %v2469_v23  ;;  %2364 = vmatpush3.bf16.msra.mxu0 %v2363_v0  ;;  %v1497_v23 = vld [vmem:[%s2786_s3 + $0xb8] sm:$0xff] }
 0x4c6   :  { %2365 = vmatprep.subr.bf16.mxu0 %v2470_v61  ;;  %v2366_v2 = vpack.c.bf16 %v1497_v23, %v1496_v1 }
 0x4c9   :  { %2367 = vmatpush3.bf16.msra.mxu0 %v2366_v2 }
 0x586   :  { %v1888_v6 = vpop.f32.mrb[12].mxu0 }
 0x587   :  { %v1889_v7 = vpop.f32.mrb[13].mxu0  ;;  %v2113_v8 = vpop.f32.mrb[14].mxu1 }
 0x588   :  { %v1890_v9 = vadd.f32 %v1889_v7, %v1888_v6  ;;  %v1374_v10 = vpop.f32.mrb[15].mxu1 }
 0x58a   :  { %v1375_v15 = vadd.f32 %v1890_v9, %v1374_v10  ;;  %v1891_v16 = vpop.f32.mrb[14].mxu0 }
 0x58b   :  { %v1892_v17 = vpop.f32.mrb[15].mxu0  ;;  %v2116_v18 = vpop.f32.mrb[16].mxu1 }
 0x58c   :  { %v1398_v19 = vadd.f32 %v1728_v12, %v1375_v15  ;;  %v1893_v20 = vadd.f32 %v1892_v17, %v1891_v16  ;;  %v1384_v21 = vpop.f32.mrb[17].mxu1 }
 0x58e   :  { %1402 = vst.msk [vmem:[#allocation5] sm:$0xff] %vm155_vm1, %v1398_v19  ;;  %v1380_v22 = vadd.f32 %v2113_v8, %v1893_v20  ;;  %v1894_v24 = vpop.f32.mrb[16].mxu0 }
 0x58f   :  { %v1895_v25 = vpop.f32.mrb[17].mxu0 }
 0x590   :  { %v1399_v14 = vadd.f32 %v1728_v12, %v1380_v22  ;;  %v1896_v61 = vadd.f32 %v1895_v25, %v1894_v24 }
 0x592   :  { %1403 = vst.msk [vmem:[#allocation5 + $0x8] sm:$0xff] %vm155_vm1, %v1399_v14  ;;  %v1385_v28 = vadd.f32 %v1896_v61, %v1384_v21  ;;  %v1897_v29 = vpop.f32.mrb[18].mxu0 }
 0x593   :  { %v1898_v30 = vpop.f32.mrb[19].mxu0 }
 0x594   :  { %v1400_v31 = vadd.f32 %v1728_v12, %v1385_v28  ;;  %v1899_v32 = vadd.f32 %v1898_v30, %v1897_v29 }
 0x596   :  { %1404 = vst.msk [vmem:[#allocation5 + $0x10] sm:$0xff] %vm155_vm1, %v1400_v31  ;;  %v1390_v34 = vadd.f32 %v2116_v18, %v1899_v32 }
 0x597   :  { %v1489_v35 = vpop.f32.mrb[20].mxu0 }
 0x598   :  { %v1401_v36 = vadd.f32 %v1728_v12, %v1390_v34  ;;  %v1490_v37 = vadd.f32 %v1729_v33, %v1489_v35  ;;  %v2135_v38 = vpop.f32.mrb[21].mxu0 }
 0x59a   :  { %1405 = vst.msk [vmem:[#allocation5 + $0x18] sm:$0xff] %vm155_vm1, %v1401_v36  ;;  %v1493_v39 = vmax.f32 %v1490_v37, 0.0 }
 0x59c   :  { %2145 = vmatmul.mubr.msk.f32.vlgmr.msra.gmra.mrb[22].mxu0 %vm1503_vm14, %v1493_v39 }
 0x66f   :  { %v1573_v44 = vpop.f32.mrb[22].mxu0 }
 0x670   :  { %v1574_v45 = vadd.f32 %v1731_v43, %v1573_v44  ;;  %v2146_v46 = vpop.f32.mrb[23].mxu0 }
 0x672   :  { %v1577_v47 = vmax.f32 %v1574_v45, 0.0 }
 0x674   :  { %2156 = vmatmul.mubr.msk.f32.vlgmr.msra.gmra.mrb[18].mxu1 %vm1503_vm14, %v1577_v47 }
 0x675   :  { %2427 = shalt.err (!%p2424_p12)
}
 0x676   :  { %s2428_s23 = scalar_lea.hbm %s2787_s4, 512 }
 0x677   :  { %p2429_p13 = scmp.ne.s32.totalorder %s2787_s4, %s2428_s23  ;;  %p2432_p0 = scmp.lt.u32.totalorder %s2428_s23, %s2787_s4 }
 0x679   :  { %p2434_p1 = pnand %p2432_p0, %p2429_p13 }
 0x67b   :  { %2437 = shalt.err (!%p2434_p1)
}
 0x67c   :  { %1673 = dma.vmem_to_hbm [thread:$0]  %s1668_s19, 512, %s2787_s4, [#allocation4], %s2467_s28, %s2467_s28, %s2468_s29   ;;  %vm1660_vm15 = vcmask 41984  }
 0x67d   :  { %v1733_v48 = vld [vmem:[%s2786_s3 + $0xe2] ss:$0 sm:$0xff]  ;;  %s2473_s8 = smov [#allocation6]  }
 0x67e   :  { %s1680_s9 = sshll.u32 %s2473_s8, 4  ;;  %s1681_s9 = int_to_ptr.vmem [resolvable:$true] %s1680_s9 }
 0x67f   :  { %s2438_s10 = scalar_lea.vmem %s1681_s9, 32  ;;  %p2443_p3 = scmp.lt.s32.totalorder %s1681_s9, %s1681_s9 }
 0x680   :  { %p2439_p2 = scmp.ne.s32.totalorder %s1681_s9, %s2438_s10  ;;  %p2444_p4 = scmp.lt.s32.totalorder %s2438_s10, %s2438_s10 }
 0x682   :  { %p2445_p5 = por %p2444_p4, %p2443_p3 }
 0x684   :  { %p2446_p6 = pnand %p2445_p5, %p2439_p2 }
 0x747   :  { %v1656_v49 = vpop.f32.mrb[18].mxu1 }
 0x748   :  { %v1657_v50 = vadd.f32 %v1733_v48, %v1656_v49  ;;  %v2157_v51 = vpop.f32.mrb[19].mxu1 }
 0x74a   :  { %1661 = vst.msk [vmem:[#allocation6] sm:$0x3] %vm1660_vm15, %v1657_v50 }
 0x74b   :  { %2449 = shalt.err (!%p2446_p6)
}
 0x74c   :  { %s2450_s29 = scalar_lea.hbm %s2788_s5, 32 }
 0x74d   :  { %p2451_p7 = scmp.ne.s32.totalorder %s2788_s5, %s2450_s29  ;;  %p2454_p8 = scmp.lt.u32.totalorder %s2450_s29, %s2788_s5 }
 0x74f   :  { %p2456_p9 = pnand %p2454_p8, %p2451_p7 }
 0x751   :  { %2459 = shalt.err (!%p2456_p9)
}
 0x752   :  { %1683 = dma.vmem_to_hbm [thread:$0]  %s1681_s9, 32, %s2788_s5, [#allocation7]  }
 0x753   :  { %2462 = dma.done.wait [#allocation4], 512  }
 0x754   :  { %2463 = vsyncadd [#allocation4], 4294966784 }
 0x755   :  { %2464 = dma.done.wait [#allocation7], 32  }
 0x756   :  { %2465 = vsyncadd [#allocation7], 4294967264 }
 0x757   :  { %1690 = vsyncpa [#allocation3], 1 }
 0x758   :  { %1691 = vsyncpa [#allocation4], 1 }
 0x759   :  { %1692 = vsyncpa [#allocation7], 1 }

</bundles_post_ra>
